<compile_context>
chip_gen: v7x
topology: tpu7x:2x2x1
jax: 0.10.0
libtpu: 0.0.40
codegen_flags: <defaults>
</compile_context>

<pallas_src>
import functools

import jax
import jax.numpy as jnp
from jax.experimental import pallas as pl
from jax.experimental.pallas import tpu as pltpu

SIGMA = 0.7          # GCN / VAE mixing coefficient (hard-coded in the module)
V = 1.0              # Student-t degrees of freedom (self.v = 1)
_LANE = 128
_VMEM_LIMIT = 48 * 1024 * 1024   # within physical VMEM on v5e/v6e (128 MiB) and v7x (64 MiB)


def _round_up(x, m):
    return (x + m - 1) // m * m


def _pick_tile(n, pref):
    """Largest tile <= pref that divides n and respects the (8,128) tiling rule."""
    if n <= pref:
        return n
    t = (pref // _LANE) * _LANE
    while t >= _LANE:
        if n % t == 0:
            return t
        t -= _LANE
    return n


def _full_spec(shape):
    """Full-array block, replicated across every grid step."""
    nd = len(shape)
    return pl.BlockSpec(shape, lambda *_: (0,) * nd)


# ----------------------------------------------------------------------------
# Kernel A: VAE path (encoder, fused head, reparam, decoder, sigmoid) + q.
# Row-tiled over N; weights are full-array VMEM residents.
# ----------------------------------------------------------------------------
def _make_vae_kernel(n_input, hid, n_clusters, slab_w):
    f32 = jnp.float32
    bf16 = jnp.bfloat16

    def kernel(x_ref, eps_ref,
               w_e1, b_e1, w_e2, b_e2, w_e3, b_e3,
               w_head, b_head,
               w_d1, b_d1, w_d2, b_d2, w_d3, b_d3,
               w_xb, b_xb, mu_ct_ref,
               tra1_out, tra2_out, tra3_out, slab_out):

        def linear(a_bf, w_ref, b_ref):
            return jnp.dot(a_bf, w_ref[...], preferred_element_type=f32) + b_ref[...]

        def relu(a):
            return jnp.maximum(a, 0.0)

        # ------------- encoder (bf16 matmuls, f32 accumulation) -------------
        x_bf = x_ref[...]                                      # bf16
        tra1 = relu(linear(x_bf, w_e1, b_e1))
        tra1_bf = tra1.astype(bf16)
        tra2 = relu(linear(tra1_bf, w_e2, b_e2))
        tra2_bf = tra2.astype(bf16)
        tra3 = relu(linear(tra2_bf, w_e3, b_e3))
        tra3_bf = tra3.astype(bf16)

        # ------------- fused mu | logvar head -------------
        head = linear(tra3_bf, w_head, b_head)                 # [tm, 2*hid] f32
        mu = head[:, :hid]
        logvar = head[:, hid:2 * hid]
        z = eps_ref[...] * jnp.exp(logvar * 0.5) + mu          # f32
        z_bf = z.astype(bf16)

        # ------------- decoder -------------
        d1 = relu(linear(z_bf, w_d1, b_d1)).astype(bf16)
        d2 = relu(linear(d1, w_d2, b_d2)).astype(bf16)
        d3 = relu(linear(d2, w_d3, b_d3)).astype(bf16)
        x_pro = linear(d3, w_xb, b_xb)
        x_bar = pl.reciprocal(1.0 + jnp.exp(-x_pro), approx=True)   # sigmoid

        # ------------- Student-t soft assignment q (MXU form) -------------
        mu_ct = mu_ct_ref[...]                                   # [hid, C] f32
        cross = jnp.dot(z, mu_ct, preferred_element_type=f32)    # [tm, C]
        z_sq = jnp.sum(z * z, axis=1, keepdims=True)             # [tm, 1]
        c_sq = jnp.sum(mu_ct * mu_ct, axis=0, keepdims=True)     # [1, C]
        dist2 = jnp.maximum(z_sq + c_sq - 2.0 * cross, 0.0)      # clamp cancellation
        den = 1.0 + (dist2 if V == 1.0 else dist2 / V)
        q = pl.reciprocal(den, approx=True)
        if (V + 1.0) / 2.0 != 1.0:                               # v = 1 -> exponent == 1
            q = q ** ((V + 1.0) / 2.0)
        q = q * pl.reciprocal(jnp.sum(q, axis=1, keepdims=True), approx=True)

        # ------------- outputs -------------
        tra1_out[...] = tra1_bf
        tra2_out[...] = tra2_bf
        tra3_out[...] = tra3_bf

        pad = slab_w - (n_input + 3 * hid + n_clusters)
        parts = [x_bar, mu, logvar, z, q]
        if pad:
            parts.append(jnp.zeros((x_bar.shape[0], pad), f32))
        slab_out[...] = jnp.concatenate(parts, axis=1)           # lane-dense store

    return kernel


def _vae_call(x_bf, eps, vae_weights, mu_ct, *, n_input, hid, n_clusters,
              enc_dims, tm):
    N = x_bf.shape[0]
    enc1, enc2, enc3 = enc_dims
    slab_w = _round_up(n_input + 3 * hid + n_clusters, _LANE)
    kernel = _make_vae_kernel(n_input, hid, n_clusters, slab_w)

    in_specs = [pl.BlockSpec((tm, n_input), lambda i: (i, 0)),
                pl.BlockSpec((tm, hid), lambda i: (i, 0))]
    in_specs += [_full_spec(a.shape) for a in vae_weights]
    in_specs += [_full_spec(mu_ct.shape)]

    out_shape = (
        jax.ShapeDtypeStruct((N, enc1), jnp.bfloat16),    # tra1 (GCN mix input)
        jax.ShapeDtypeStruct((N, enc2), jnp.bfloat16),    # tra2
        jax.ShapeDtypeStruct((N, enc3), jnp.bfloat16),    # tra3
        jax.ShapeDtypeStruct((N, slab_w), jnp.float32),   # x_bar|mu|logvar|z|q slab
    )
    out_specs = (
        pl.BlockSpec((tm, enc1), lambda i: (i, 0)),
        pl.BlockSpec((tm, enc2), lambda i: (i, 0)),
        pl.BlockSpec((tm, enc3), lambda i: (i, 0)),
        pl.BlockSpec((tm, slab_w), lambda i: (i, 0)),
    )
    return pl.pallas_call(
        kernel,
        out_shape=out_shape,
        grid=(N // tm,),
        in_specs=in_specs,
        out_specs=out_specs,
        compiler_params=pltpu.CompilerParams(
            dimension_semantics=("parallel",),
            vmem_limit_bytes=_VMEM_LIMIT),
    )(x_bf, eps, *vae_weights, mu_ct)


# ----------------------------------------------------------------------------
# Kernel B: one GNN layer  out = relu(adj @ ((1-s)*h + s*mix) @ W)
# (row, k) grid, f32 accumulator, adjacency streamed tile-by-tile.
# ----------------------------------------------------------------------------
def _gcn_layer_call(adj_bf, feat_h, feat_mix, w_bf, *, active, final_softmax,
                    tm, tk):
    N = adj_bf.shape[0]
    d_in, d_out = w_bf.shape
    assert feat_h.shape[1] == d_in
    adj_first = d_out > d_in                      # cheaper order: (adj@feat)@W
    d_acc = d_in if adj_first else d_out
    out_cols = _round_up(d_out, _LANE) if final_softmax else d_out
    out_dtype = jnp.float32 if final_softmax else jnp.bfloat16
    mix = feat_mix is not None

    def _body(adj_ref, fh_ref, fm_ref, w_ref, out_ref, acc_ref):
        k = pl.program_id(1)

        @pl.when(k == 0)
        def _():
            acc_ref[...] = jnp.zeros_like(acc_ref)

        feat = fh_ref[...].astype(jnp.float32)
        if fm_ref is not None:
            feat = (1.0 - SIGMA) * feat + SIGMA * fm_ref[...].astype(jnp.float32)
        feat = feat.astype(jnp.bfloat16)

        if adj_first:
            acc_ref[...] += jnp.dot(adj_ref[...], feat,
                                    preferred_element_type=jnp.float32)
        else:
            support = jnp.dot(feat, w_ref[...],
                              preferred_element_type=jnp.float32).astype(jnp.bfloat16)
            acc_ref[...] += jnp.dot(adj_ref[...], support,
                                    preferred_element_type=jnp.float32)

        @pl.when(k == pl.num_programs(1) - 1)
        def _():
            h = acc_ref[...]
            if adj_first:
                h = jnp.dot(h.astype(jnp.bfloat16), w_ref[...],
                            preferred_element_type=jnp.float32)
            if active:
                h = jnp.maximum(h, 0.0)
            if final_softmax:
                m = jnp.max(h, axis=1, keepdims=True)
                e = jnp.exp(h - m)
                p = e * pl.reciprocal(jnp.sum(e, axis=1, keepdims=True), approx=True)
                pad = out_cols - d_out
                if pad:
                    p = jnp.concatenate(
                        [p, jnp.zeros((p.shape[0], pad), p.dtype)], axis=1)
                out_ref[...] = p
            else:
                out_ref[...] = h.astype(out_ref.dtype)

    if mix:
        def kernel(adj_ref, fh_ref, fm_ref, w_ref, out_ref, acc_ref):
            _body(adj_ref, fh_ref, fm_ref, w_ref, out_ref, acc_ref)
        in_arrays = (adj_bf, feat_h, feat_mix, w_bf)
        in_specs = [pl.BlockSpec((tm, tk), lambda i, k: (i, k)),
                    pl.BlockSpec((tk, d_in), lambda i, k: (k, 0)),
                    pl.BlockSpec((tk, d_in), lambda i, k: (k, 0)),
                    _full_spec(w_bf.shape)]
    else:
        def kernel(adj_ref, fh_ref, w_ref, out_ref, acc_ref):
            _body(adj_ref, fh_ref, None, w_ref, out_ref, acc_ref)
        in_arrays = (adj_bf, feat_h, w_bf)
        in_specs = [pl.BlockSpec((tm, tk), lambda i, k: (i, k)),
                    pl.BlockSpec((tk, d_in), lambda i, k: (k, 0)),
                    _full_spec(w_bf.shape)]

    return pl.pallas_call(
        kernel,
        out_shape=jax.ShapeDtypeStruct((N, out_cols), out_dtype),
        grid=(N // tm, N // tk),
        in_specs=in_specs,
        out_specs=pl.BlockSpec((tm, out_cols), lambda i, k: (i, 0)),
        scratch_shapes=[pltpu.VMEM((tm, d_acc), jnp.float32)],
        compiler_params=pltpu.CompilerParams(
            dimension_semantics=("parallel", "arbitrary"),
            vmem_limit_bytes=_VMEM_LIMIT),
    )(*in_arrays)


# ----------------------------------------------------------------------------
# Full forward pass (matches VaDE.forward semantics).
# ----------------------------------------------------------------------------
def vade_forward(x, adj, eps, params):
    N, n_input = x.shape
    hid = params["w_mu"].shape[1]
    n_clusters = params["g5"].shape[1]
    bf16 = jnp.bfloat16

    x_bf = x.astype(bf16)
    adj_bf = adj.astype(bf16)

    def wcast(name):
        return params[name].astype(bf16)

    # Fused mu|logvar head weights (one wide matmul instead of two narrow ones).
    w_head = jnp.concatenate([params["w_mu"], params["w_ls"]], axis=1).astype(bf16)
    b_head = jnp.concatenate([params["b_mu"], params["b_ls"]], axis=1)

    vae_weights = [
        wcast("w_e1"), params["b_e1"], wcast("w_e2"), params["b_e2"],
        wcast("w_e3"), params["b_e3"],
        w_head, b_head,
        wcast("w_d1"), params["b_d1"], wcast("w_d2"), params["b_d2"],
        wcast("w_d3"), params["b_d3"], wcast("w_xb"), params["b_xb"],
    ]
    mu_ct = params["mu_c"].T.astype(jnp.float32)   # [hid, C], f32 for q accuracy

    tm = _pick_tile(N, 256)   # row tile (parallel -> both TCs on v7x)
    tk = _pick_tile(N, 256)   # adjacency reduction tile (arbitrary)

    tra1, tra2, tra3, slab = _vae_call(
        x_bf, eps, vae_weights, mu_ct,
        n_input=n_input, hid=hid, n_clusters=n_clusters,
        enc_dims=(params["w_e1"].shape[1], params["w_e2"].shape[1],
                  params["w_e3"].shape[1]),
        tm=tm)

    o = 0
    x_bar = slab[:, o:o + n_input]; o += n_input
    mu = slab[:, o:o + hid]; o += hid
    logvar = slab[:, o:o + hid]; o += hid
    z = slab[:, o:o + hid]; o += hid
    q = slab[:, o:o + n_clusters]

    gcn = functools.partial(_gcn_layer_call, tm=tm, tk=tk)
    h = gcn(adj_bf, x_bf, None, wcast("g1"), active=True, final_softmax=False)
    h = gcn(adj_bf, h, tra1, wcast("g2"), active=True, final_softmax=False)
    h = gcn(adj_bf, h, tra2, wcast("g3"), active=True, final_softmax=False)
    h = gcn(adj_bf, h, tra3, wcast("g4"), active=True, final_softmax=False)
    pred_pad = gcn(adj_bf, h, z, wcast("g5"), active=False, final_softmax=True)
    predict = pred_pad[:, :n_clusters]

    return mu, logvar, z, x_bar, predict, q


# ---------------- deterministic parameter init (synthetic) ----------------
def _init_linear(key, d_in, d_out):
    k1, k2 = jax.random.split(key)
    lim = 1.0 / (d_in ** 0.5)
    w = jax.random.uniform(k1, (d_in, d_out), jnp.float32, -lim, lim)
    b = jax.random.uniform(k2, (1, d_out), jnp.float32, -lim, lim)
    return w, b


def _init_gnn(key, d_in, d_out):
    lim = (6.0 / (d_in + d_out)) ** 0.5            # xavier uniform
    return jax.random.uniform(key, (d_in, d_out), jnp.float32, -lim, lim)


def make_params(key, n_input, n_enc_1, n_enc_2, n_enc_3,
                n_dec_1, n_dec_2, n_dec_3, hid_dim, n_clusters):
    ks = jax.random.split(key, 16)
    p = {}
    p["w_e1"], p["b_e1"] = _init_linear(ks[0], n_input, n_enc_1)
    p["w_e2"], p["b_e2"] = _init_linear(ks[1], n_enc_1, n_enc_2)
    p["w_e3"], p["b_e3"] = _init_linear(ks[2], n_enc_2, n_enc_3)
    p["w_mu"], p["b_mu"] = _init_linear(ks[3], n_enc_3, hid_dim)
    p["w_ls"], p["b_ls"] = _init_linear(ks[4], n_enc_3, hid_dim)
    p["w_d1"], p["b_d1"] = _init_linear(ks[5], hid_dim, n_dec_1)
    p["w_d2"], p["b_d2"] = _init_linear(ks[6], n_dec_1, n_dec_2)
    p["w_d3"], p["b_d3"] = _init_linear(ks[7], n_dec_2, n_dec_3)
    p["w_xb"], p["b_xb"] = _init_linear(ks[8], n_dec_3, n_input)
    p["g1"] = _init_gnn(ks[9], n_input, n_enc_1)
    p["g2"] = _init_gnn(ks[10], n_enc_1, n_enc_2)
    p["g3"] = _init_gnn(ks[11], n_enc_2, n_enc_3)
    p["g4"] = _init_gnn(ks[12], n_enc_3, hid_dim)
    p["g5"] = _init_gnn(ks[13], hid_dim, n_clusters)
    # mu_c is zeros in the module's __init__; use small random values here so
    # the soft assignment q is non-trivial (synthetic init, no checkpoint).
    p["mu_c"] = 0.1 * jax.random.normal(ks[14], (n_clusters, hid_dim), jnp.float32)
    # TODO(synk): pi_ / log_sigma2_c are unused in forward(); not materialized.
    return p


if __name__ == "__main__":
    # Small shapes consistent with the module's forward pass (n_enc_3 > n_enc_2
    # also exercises the (adj @ feat) @ W matmul-order path).
    N = 16           # number of graph nodes (rows of x / adj)
    n_input = 32
    n_enc_1, n_enc_2, n_enc_3 = 32, 32, 64
    n_dec_1, n_dec_2, n_dec_3 = 64, 32, 32
    hid_dim = 16
    n_clusters = 8

    key = jax.random.PRNGKey(0)
    k_x, k_adj, k_eps, k_par = jax.random.split(key, 4)

    x = jax.random.uniform(k_x, (N, n_input), jnp.float32)
    adj_raw = jax.random.uniform(k_adj, (N, N), jnp.float32) + jnp.eye(N)
    adj = adj_raw / jnp.sum(adj_raw, axis=1, keepdims=True)   # row-normalized
    eps = jax.random.normal(k_eps, (N, hid_dim), jnp.float32)

    params = make_params(k_par, n_input, n_enc_1, n_enc_2, n_enc_3,
                         n_dec_1, n_dec_2, n_dec_3, hid_dim, n_clusters)

    fwd = jax.jit(vade_forward)
    mu, logvar, z, x_bar, predict, q = jax.block_until_ready(
        fwd(x, adj, eps, params))

    assert mu.shape == (N, hid_dim)
    assert logvar.shape == (N, hid_dim)
    assert z.shape == (N, hid_dim)
    assert x_bar.shape == (N, n_input)
    assert predict.shape == (N, n_clusters)
    assert q.shape == (N, n_clusters)
    assert bool(jnp.all(jnp.isfinite(predict))) and bool(jnp.all(jnp.isfinite(q)))
    assert bool(jnp.all(q >= 0.0)) and bool(jnp.all(predict >= 0.0))

    print("KERNEL_OK")
</pallas_src>

<mosaic_0001>
module attributes {stable_mosaic.version = 11 : i64} {
  func.func @kernel(%arg0: i32, %arg1: i32, %arg2: memref<16x16xbf16, #tpu.memory_space<vmem>>, %arg3: memref<16x32xbf16, #tpu.memory_space<vmem>>, %arg4: memref<32x32xbf16, #tpu.memory_space<vmem>>, %arg5: memref<16x32xbf16, #tpu.memory_space<vmem>>, %arg6: memref<16x32xf32, #tpu.memory_space<vmem>>) attributes {dimension_semantics = [#tpu.dimension_semantics<parallel>, #tpu.dimension_semantics<arbitrary>], iteration_bounds = array<i64: 1, 1>, scalar_prefetch = 0 : i64, scratch_operands = 1 : i64, tpu.core_type = #tpu.core_type<tc>, window_params = [{transform_indices = @transform_0, window_bounds = array<i64: 16, 16>}, {transform_indices = @transform_1, window_bounds = array<i64: 16, 32>}, {pipeline_mode = #tpu.pipeline_mode<synchronous>, transform_indices = @transform_2, window_bounds = array<i64: 32, 32>}, {transform_indices = @transform_3, window_bounds = array<i64: 16, 32>}]} {
    %c0_i32 = arith.constant 0 : i32
    %0 = arith.cmpi eq, %arg1, %c0_i32 : i32
    %1 = arith.extui %0 : i1 to i32
    %c0_i32_0 = arith.constant 0 : i32
    %2 = arith.cmpi ne, %1, %c0_i32_0 : i32
    scf.if %2 {
      %cst_13 = arith.constant 0.000000e+00 : f32
      %17 = vector.broadcast %cst_13 : f32 to vector<16x32xf32>
      %c0_14 = arith.constant 0 : index
      %c0_15 = arith.constant 0 : index
      %18 = vector.load %arg6[%c0_14, %c0_15] : memref<16x32xf32, #tpu.memory_space<vmem>>, vector<16x32xf32>
      tpu.vector_store %arg6[%c0_14, %c0_15], %17 {strides = array<i32>} : memref<16x32xf32, #tpu.memory_space<vmem>>, vector<16x32xf32>,
    } else {
    }
    %c0 = arith.constant 0 : index
    %c0_1 = arith.constant 0 : index
    %3 = vector.load %arg3[%c0, %c0_1] : memref<16x32xbf16, #tpu.memory_space<vmem>>, vector<16x32xbf16>
    %4 = arith.extf %3 : vector<16x32xbf16> to vector<16x32xf32>
    %5 = arith.truncf %4 : vector<16x32xf32> to vector<16x32xbf16>
    %c0_2 = arith.constant 0 : index
    %c0_3 = arith.constant 0 : index
    %6 = vector.load %arg4[%c0_2, %c0_3] : memref<32x32xbf16, #tpu.memory_space<vmem>>, vector<32x32xbf16>
    %cst = arith.constant dense<0.000000e+00> : vector<16x32xf32>
    %7 = tpu.matmul %5, %6, %cst {dimension_numbers = #tpu.dot_dimension_numbers<[1], [0], [0], [1], [0, 0, 1, 1], [], []>} : vector<16x32xbf16>, vector<32x32xbf16>, vector<16x32xf32> -> vector<16x32xf32>
    %8 = arith.truncf %7 : vector<16x32xf32> to vector<16x32xbf16>
    %c0_4 = arith.constant 0 : index
    %c0_5 = arith.constant 0 : index
    %9 = vector.load %arg6[%c0_4, %c0_5] : memref<16x32xf32, #tpu.memory_space<vmem>>, vector<16x32xf32>
    %c0_6 = arith.constant 0 : index
    %c0_7 = arith.constant 0 : index
    %10 = vector.load %arg2[%c0_6, %c0_7] : memref<16x16xbf16, #tpu.memory_space<vmem>>, vector<16x16xbf16>
    %cst_8 = arith.constant dense<0.000000e+00> : vector<16x32xf32>
    %11 = tpu.matmul %10, %8, %cst_8 {dimension_numbers = #tpu.dot_dimension_numbers<[1], [0], [0], [1], [0, 0, 1, 1], [], []>} : vector<16x16xbf16>, vector<16x32xbf16>, vector<16x32xf32> -> vector<16x32xf32>
    %12 = arith.addf %9, %11 : vector<16x32xf32>
    %c0_9 = arith.constant 0 : index
    %c0_10 = arith.constant 0 : index
    %13 = vector.load %arg6[%c0_9, %c0_10] : memref<16x32xf32, #tpu.memory_space<vmem>>, vector<16x32xf32>
    tpu.vector_store %arg6[%c0_9, %c0_10], %12 {strides = array<i32>} : memref<16x32xf32, #tpu.memory_space<vmem>>, vector<16x32xf32>,
    %c0_i32_11 = arith.constant 0 : i32
    %14 = arith.cmpi eq, %arg1, %c0_i32_11 : i32
    %15 = arith.extui %14 : i1 to i32
    %c0_i32_12 = arith.constant 0 : i32
    %16 = arith.cmpi ne, %15, %c0_i32_12 : i32
    scf.if %16 {
      %c0_13 = arith.constant 0 : index
      %c0_14 = arith.constant 0 : index
      %17 = vector.load %arg6[%c0_13, %c0_14] : memref<16x32xf32, #tpu.memory_space<vmem>>, vector<16x32xf32>
      %cst_15 = arith.constant 0.000000e+00 : f32
      %18 = vector.broadcast %cst_15 : f32 to vector<16x32xf32>
      %19 = arith.maximumf %17, %18 : vector<16x32xf32>
      %20 = arith.truncf %19 : vector<16x32xf32> to vector<16x32xbf16>
      %c0_16 = arith.constant 0 : index
      %c0_17 = arith.constant 0 : index
      %21 = vector.load %arg5[%c0_16, %c0_17] : memref<16x32xbf16, #tpu.memory_space<vmem>>, vector<16x32xbf16>
      tpu.vector_store %arg5[%c0_16, %c0_17], %20 {strides = array<i32>} : memref<16x32xbf16, #tpu.memory_space<vmem>>, vector<16x32xbf16>,
    } else {
    }
    return
  }
  func.func @transform_0(%arg0: i32, %arg1: i32) -> (i32, i32) {
    %c0_i32 = arith.constant 0 : i32
    return %arg0, %arg1 : i32, i32
  }
  func.func @transform_1(%arg0: i32, %arg1: i32) -> (i32, i32) {
    %c0_i32 = arith.constant 0 : i32
    %c0_i32_0 = arith.constant 0 : i32
    return %arg1, %c0_i32 : i32, i32
  }
  func.func @transform_2(%arg0: i32, %arg1: i32) -> (i32, i32) {
    %c0_i32 = arith.constant 0 : i32
    %c0_i32_0 = arith.constant 0 : i32
    %c0_i32_1 = arith.constant 0 : i32
    return %c0_i32, %c0_i32_0 : i32, i32
  }
  func.func @transform_3(%arg0: i32, %arg1: i32) -> (i32, i32) {
    %c0_i32 = arith.constant 0 : i32
    %c0_i32_0 = arith.constant 0 : i32
    return %arg0, %c0_i32 : i32, i32
  }
}

module attributes {stable_mosaic.version = 11 : i64} {
  func.func @kernel(%arg0: i32, %arg1: memref<16x32xbf16, #tpu.memory_space<vmem>>, %arg2: memref<16x16xf32, #tpu.memory_space<vmem>>, %arg3: memref<32x32xbf16, #tpu.memory_space<vmem>>, %arg4: memref<1x32xf32, #tpu.memory_space<vmem>>, %arg5: memref<32x32xbf16, #tpu.memory_space<vmem>>, %arg6: memref<1x32xf32, #tpu.memory_space<vmem>>, %arg7: memref<32x64xbf16, #tpu.memory_space<vmem>>, %arg8: memref<1x64xf32, #tpu.memory_space<vmem>>, %arg9: memref<64x32xbf16, #tpu.memory_space<vmem>>, %arg10: memref<1x32xf32, #tpu.memory_space<vmem>>, %arg11: memref<16x64xbf16, #tpu.memory_space<vmem>>, %arg12: memref<1x64xf32, #tpu.memory_space<vmem>>, %arg13: memref<64x32xbf16, #tpu.memory_space<vmem>>, %arg14: memref<1x32xf32, #tpu.memory_space<vmem>>, %arg15: memref<32x32xbf16, #tpu.memory_space<vmem>>, %arg16: memref<1x32xf32, #tpu.memory_space<vmem>>, %arg17: memref<32x32xbf16, #tpu.memory_space<vmem>>, %arg18: memref<1x32xf32, #tpu.memory_space<vmem>>, %arg19: memref<16x8xf32, #tpu.memory_space<vmem>>, %arg20: memref<16x32xbf16, #tpu.memory_space<vmem>>, %arg21: memref<16x32xbf16, #tpu.memory_space<vmem>>, %arg22: memref<16x64xbf16, #tpu.memory_space<vmem>>, %arg23: memref<16x128xf32, #tpu.memory_space<vmem>>) attributes {dimension_semantics = [#tpu.dimension_semantics<parallel>], iteration_bounds = array<i64: 1>, scalar_prefetch = 0 : i64, scratch_operands = 0 : i64, tpu.core_type = #tpu.core_type<tc>, window_params = [{transform_indices = @transform_0, window_bounds = array<i64: 16, 32>}, {transform_indices = @transform_1, window_bounds = array<i64: 16, 16>}, {pipeline_mode = #tpu.pipeline_mode<synchronous>, transform_indices = @transform_2, window_bounds = array<i64: 32, 32>}, {pipeline_mode = #tpu.pipeline_mode<synchronous>, transform_indices = @transform_3, window_bounds = array<i64: 1, 32>}, {pipeline_mode = #tpu.pipeline_mode<synchronous>, transform_indices = @transform_4, window_bounds = array<i64: 32, 32>}, {pipeline_mode = #tpu.pipeline_mode<synchronous>, transform_indices = @transform_5, window_bounds = array<i64: 1, 32>}, {pipeline_mode = #tpu.pipeline_mode<synchronous>, transform_indices = @transform_6, window_bounds = array<i64: 32, 64>}, {pipeline_mode = #tpu.pipeline_mode<synchronous>, transform_indices = @transform_7, window_bounds = array<i64: 1, 64>}, {pipeline_mode = #tpu.pipeline_mode<synchronous>, transform_indices = @transform_8, window_bounds = array<i64: 64, 32>}, {pipeline_mode = #tpu.pipeline_mode<synchronous>, transform_indices = @transform_9, window_bounds = array<i64: 1, 32>}, {pipeline_mode = #tpu.pipeline_mode<synchronous>, transform_indices = @transform_10, window_bounds = array<i64: 16, 64>}, {pipeline_mode = #tpu.pipeline_mode<synchronous>, transform_indices = @transform_11, window_bounds = array<i64: 1, 64>}, {pipeline_mode = #tpu.pipeline_mode<synchronous>, transform_indices = @transform_12, window_bounds = array<i64: 64, 32>}, {pipeline_mode = #tpu.pipeline_mode<synchronous>, transform_indices = @transform_13, window_bounds = array<i64: 1, 32>}, {pipeline_mode = #tpu.pipeline_mode<synchronous>, transform_indices = @transform_14, window_bounds = array<i64: 32, 32>}, {pipeline_mode = #tpu.pipeline_mode<synchronous>, transform_indices = @transform_15, window_bounds = array<i64: 1, 32>}, {pipeline_mode = #tpu.pipeline_mode<synchronous>, transform_indices = @transform_16, window_bounds = array<i64: 32, 32>}, {pipeline_mode = #tpu.pipeline_mode<synchronous>, transform_indices = @transform_17, window_bounds = array<i64: 1, 32>}, {pipeline_mode = #tpu.pipeline_mode<synchronous>, transform_indices = @transform_18, window_bounds = array<i64: 16, 8>}, {transform_indices = @transform_19, window_bounds = array<i64: 16, 32>}, {transform_indices = @transform_20, window_bounds = array<i64: 16, 32>}, {transform_indices = @transform_21, window_bounds = array<i64: 16, 64>}, {transform_indices = @transform_22, window_bounds = array<i64: 16, 128>}]} {
    %c0 = arith.constant 0 : index
    %c0_0 = arith.constant 0 : index
    %0 = vector.load %arg1[%c0, %c0_0] : memref<16x32xbf16, #tpu.memory_space<vmem>>, vector<16x32xbf16>
    %c0_1 = arith.constant 0 : index
    %c0_2 = arith.constant 0 : index
    %1 = vector.load %arg3[%c0_1, %c0_2] : memref<32x32xbf16, #tpu.memory_space<vmem>>, vector<32x32xbf16>
    %cst = arith.constant dense<0.000000e+00> : vector<16x32xf32>
    %2 = tpu.matmul %0, %1, %cst {dimension_numbers = #tpu.dot_dimension_numbers<[1], [0], [0], [1], [0, 0, 1, 1], [], []>} : vector<16x32xbf16>, vector<32x32xbf16>, vector<16x32xf32> -> vector<16x32xf32>
    %c0_3 = arith.constant 0 : index
    %c0_4 = arith.constant 0 : index
    %3 = vector.load %arg4[%c0_3, %c0_4] : memref<1x32xf32, #tpu.memory_space<vmem>>, vector<1x32xf32>
    %4 = vector.broadcast %3 : vector<1x32xf32> to vector<16x32xf32>
    %5 = arith.addf %2, %4 : vector<16x32xf32>
    %cst_5 = arith.constant 0.000000e+00 : f32
    %6 = vector.broadcast %cst_5 : f32 to vector<16x32xf32>
    %7 = arith.maximumf %5, %6 : vector<16x32xf32>
    %8 = arith.truncf %7 : vector<16x32xf32> to vector<16x32xbf16>
    %c0_6 = arith.constant 0 : index
    %c0_7 = arith.constant 0 : index
    %9 = vector.load %arg5[%c0_6, %c0_7] : memref<32x32xbf16, #tpu.memory_space<vmem>>, vector<32x32xbf16>
    %cst_8 = arith.constant dense<0.000000e+00> : vector<16x32xf32>
    %10 = tpu.matmul %8, %9, %cst_8 {dimension_numbers = #tpu.dot_dimension_numbers<[1], [0], [0], [1], [0, 0, 1, 1], [], []>} : vector<16x32xbf16>, vector<32x32xbf16>, vector<16x32xf32> -> vector<16x32xf32>
    %c0_9 = arith.constant 0 : index
    %c0_10 = arith.constant 0 : index
    %11 = vector.load %arg6[%c0_9, %c0_10] : memref<1x32xf32, #tpu.memory_space<vmem>>, vector<1x32xf32>
    %12 = vector.broadcast %11 : vector<1x32xf32> to vector<16x32xf32>
    %13 = arith.addf %10, %12 : vector<16x32xf32>
    %cst_11 = arith.constant 0.000000e+00 : f32
    %14 = vector.broadcast %cst_11 : f32 to vector<16x32xf32>
    %15 = arith.maximumf %13, %14 : vector<16x32xf32>
    %16 = arith.truncf %15 : vector<16x32xf32> to vector<16x32xbf16>
    %c0_12 = arith.constant 0 : index
    %c0_13 = arith.constant 0 : index
    %17 = vector.load %arg7[%c0_12, %c0_13] : memref<32x64xbf16, #tpu.memory_space<vmem>>, vector<32x64xbf16>
    %cst_14 = arith.constant dense<0.000000e+00> : vector<16x64xf32>
    %18 = tpu.matmul %16, %17, %cst_14 {dimension_numbers = #tpu.dot_dimension_numbers<[1], [0], [0], [1], [0, 0, 1, 1], [], []>} : vector<16x32xbf16>, vector<32x64xbf16>, vector<16x64xf32> -> vector<16x64xf32>
    %c0_15 = arith.constant 0 : index
    %c0_16 = arith.constant 0 : index
    %19 = vector.load %arg8[%c0_15, %c0_16] : memref<1x64xf32, #tpu.memory_space<vmem>>, vector<1x64xf32>
    %20 = vector.broadcast %19 : vector<1x64xf32> to vector<16x64xf32>
    %21 = arith.addf %18, %20 : vector<16x64xf32>
    %cst_17 = arith.constant 0.000000e+00 : f32
    %22 = vector.broadcast %cst_17 : f32 to vector<16x64xf32>
    %23 = arith.maximumf %21, %22 : vector<16x64xf32>
    %24 = arith.truncf %23 : vector<16x64xf32> to vector<16x64xbf16>
    %c0_18 = arith.constant 0 : index
    %c0_19 = arith.constant 0 : index
    %25 = vector.load %arg9[%c0_18, %c0_19] : memref<64x32xbf16, #tpu.memory_space<vmem>>, vector<64x32xbf16>
    %cst_20 = arith.constant dense<0.000000e+00> : vector<16x32xf32>
    %26 = tpu.matmul %24, %25, %cst_20 {dimension_numbers = #tpu.dot_dimension_numbers<[1], [0], [0], [1], [0, 0, 1, 1], [], []>} : vector<16x64xbf16>, vector<64x32xbf16>, vector<16x32xf32> -> vector<16x32xf32>
    %c0_21 = arith.constant 0 : index
    %c0_22 = arith.constant 0 : index
    %27 = vector.load %arg10[%c0_21, %c0_22] : memref<1x32xf32, #tpu.memory_space<vmem>>, vector<1x32xf32>
    %28 = vector.broadcast %27 : vector<1x32xf32> to vector<16x32xf32>
    %29 = arith.addf %26, %28 : vector<16x32xf32>
    %30 = vector.extract_strided_slice %29 {offsets = [0, 0], sizes = [16, 16], strides = [1, 1]} : vector<16x32xf32> to vector<16x16xf32>
    %31 = vector.extract_strided_slice %29 {offsets = [0, 16], sizes = [16, 16], strides = [1, 1]} : vector<16x32xf32> to vector<16x16xf32>
    %c0_23 = arith.constant 0 : index
    %c0_24 = arith.constant 0 : index
    %32 = vector.load %arg2[%c0_23, %c0_24] : memref<16x16xf32, #tpu.memory_space<vmem>>, vector<16x16xf32>
    %cst_25 = arith.constant 5.000000e-01 : f32
    %33 = vector.broadcast %cst_25 : f32 to vector<16x16xf32>
    %34 = arith.mulf %31, %33 : vector<16x16xf32>
    %35 = math.exp %34 : vector<16x16xf32>
    %36 = arith.mulf %32, %35 : vector<16x16xf32>
    %37 = arith.addf %36, %30 : vector<16x16xf32>
    %38 = arith.truncf %37 : vector<16x16xf32> to vector<16x16xbf16>
    %c0_26 = arith.constant 0 : index
    %c0_27 = arith.constant 0 : index
    %39 = vector.load %arg11[%c0_26, %c0_27] : memref<16x64xbf16, #tpu.memory_space<vmem>>, vector<16x64xbf16>
    %cst_28 = arith.constant dense<0.000000e+00> : vector<16x64xf32>
    %40 = tpu.matmul %38, %39, %cst_28 {dimension_numbers = #tpu.dot_dimension_numbers<[1], [0], [0], [1], [0, 0, 1, 1], [], []>} : vector<16x16xbf16>, vector<16x64xbf16>, vector<16x64xf32> -> vector<16x64xf32>
    %c0_29 = arith.constant 0 : index
    %c0_30 = arith.constant 0 : index
    %41 = vector.load %arg12[%c0_29, %c0_30] : memref<1x64xf32, #tpu.memory_space<vmem>>, vector<1x64xf32>
    %42 = vector.broadcast %41 : vector<1x64xf32> to vector<16x64xf32>
    %43 = arith.addf %40, %42 : vector<16x64xf32>
    %cst_31 = arith.constant 0.000000e+00 : f32
    %44 = vector.broadcast %cst_31 : f32 to vector<16x64xf32>
    %45 = arith.maximumf %43, %44 : vector<16x64xf32>
    %46 = arith.truncf %45 : vector<16x64xf32> to vector<16x64xbf16>
    %c0_32 = arith.constant 0 : index
    %c0_33 = arith.constant 0 : index
    %47 = vector.load %arg13[%c0_32, %c0_33] : memref<64x32xbf16, #tpu.memory_space<vmem>>, vector<64x32xbf16>
    %cst_34 = arith.constant dense<0.000000e+00> : vector<16x32xf32>
    %48 = tpu.matmul %46, %47, %cst_34 {dimension_numbers = #tpu.dot_dimension_numbers<[1], [0], [0], [1], [0, 0, 1, 1], [], []>} : vector<16x64xbf16>, vector<64x32xbf16>, vector<16x32xf32> -> vector<16x32xf32>
    %c0_35 = arith.constant 0 : index
    %c0_36 = arith.constant 0 : index
    %49 = vector.load %arg14[%c0_35, %c0_36] : memref<1x32xf32, #tpu.memory_space<vmem>>, vector<1x32xf32>
    %50 = vector.broadcast %49 : vector<1x32xf32> to vector<16x32xf32>
    %51 = arith.addf %48, %50 : vector<16x32xf32>
    %cst_37 = arith.constant 0.000000e+00 : f32
    %52 = vector.broadcast %cst_37 : f32 to vector<16x32xf32>
    %53 = arith.maximumf %51, %52 : vector<16x32xf32>
    %54 = arith.truncf %53 : vector<16x32xf32> to vector<16x32xbf16>
    %c0_38 = arith.constant 0 : index
    %c0_39 = arith.constant 0 : index
    %55 = vector.load %arg15[%c0_38, %c0_39] : memref<32x32xbf16, #tpu.memory_space<vmem>>, vector<32x32xbf16>
    %cst_40 = arith.constant dense<0.000000e+00> : vector<16x32xf32>
    %56 = tpu.matmul %54, %55, %cst_40 {dimension_numbers = #tpu.dot_dimension_numbers<[1], [0], [0], [1], [0, 0, 1, 1], [], []>} : vector<16x32xbf16>, vector<32x32xbf16>, vector<16x32xf32> -> vector<16x32xf32>
    %c0_41 = arith.constant 0 : index
    %c0_42 = arith.constant 0 : index
    %57 = vector.load %arg16[%c0_41, %c0_42] : memref<1x32xf32, #tpu.memory_space<vmem>>, vector<1x32xf32>
    %58 = vector.broadcast %57 : vector<1x32xf32> to vector<16x32xf32>
    %59 = arith.addf %56, %58 : vector<16x32xf32>
    %cst_43 = arith.constant 0.000000e+00 : f32
    %60 = vector.broadcast %cst_43 : f32 to vector<16x32xf32>
    %61 = arith.maximumf %59, %60 : vector<16x32xf32>
    %62 = arith.truncf %61 : vector<16x32xf32> to vector<16x32xbf16>
    %c0_44 = arith.constant 0 : index
    %c0_45 = arith.constant 0 : index
    %63 = vector.load %arg17[%c0_44, %c0_45] : memref<32x32xbf16, #tpu.memory_space<vmem>>, vector<32x32xbf16>
    %cst_46 = arith.constant dense<0.000000e+00> : vector<16x32xf32>
    %64 = tpu.matmul %62, %63, %cst_46 {dimension_numbers = #tpu.dot_dimension_numbers<[1], [0], [0], [1], [0, 0, 1, 1], [], []>} : vector<16x32xbf16>, vector<32x32xbf16>, vector<16x32xf32> -> vector<16x32xf32>
    %c0_47 = arith.constant 0 : index
    %c0_48 = arith.constant 0 : index
    %65 = vector.load %arg18[%c0_47, %c0_48] : memref<1x32xf32, #tpu.memory_space<vmem>>, vector<1x32xf32>
    %66 = vector.broadcast %65 : vector<1x32xf32> to vector<16x32xf32>
    %67 = arith.addf %64, %66 : vector<16x32xf32>
    %cst_49 = arith.constant 0.000000e+00 : f32
    %68 = vector.broadcast %cst_49 : f32 to vector<16x32xf32>
    %69 = arith.subf %68, %67 : vector<16x32xf32>
    %70 = math.exp %69 : vector<16x32xf32>
    %cst_50 = arith.constant 1.000000e+00 : f32
    %71 = vector.broadcast %cst_50 : f32 to vector<16x32xf32>
    %72 = arith.addf %71, %70 : vector<16x32xf32>
    %73 = tpu.reciprocal %72 {approx = true} : vector<16x32xf32> -> vector<16x32xf32>
    %c0_51 = arith.constant 0 : index
    %c0_52 = arith.constant 0 : index
    %74 = vector.load %arg19[%c0_51, %c0_52] : memref<16x8xf32, #tpu.memory_space<vmem>>, vector<16x8xf32>
    %cst_53 = arith.constant dense<0.000000e+00> : vector<16x8xf32>
    %75 = tpu.matmul %37, %74, %cst_53 {dimension_numbers = #tpu.dot_dimension_numbers<[1], [0], [0], [1], [0, 0, 1, 1], [], []>} : vector<16x16xf32>, vector<16x8xf32>, vector<16x8xf32> -> vector<16x8xf32>
    %76 = arith.mulf %37, %37 : vector<16x16xf32>
    %cst_54 = arith.constant dense<0.000000e+00> : vector<16xf32>
    %77 = vector.multi_reduction <add>, %76, %cst_54 [1] : vector<16x16xf32> to vector<16xf32>
    %78 = vector.shape_cast %77 : vector<16xf32> to vector<16x1xf32>
    %79 = arith.mulf %74, %74 : vector<16x8xf32>
    %cst_55 = arith.constant dense<0.000000e+00> : vector<8xf32>
    %80 = vector.multi_reduction <add>, %79, %cst_55 [0] : vector<16x8xf32> to vector<8xf32>
    %81 = vector.shape_cast %80 : vector<8xf32> to vector<1x8xf32>
    %82 = vector.broadcast %78 : vector<16x1xf32> to vector<16x8xf32>
    %83 = vector.broadcast %81 : vector<1x8xf32> to vector<16x8xf32>
    %84 = arith.addf %82, %83 : vector<16x8xf32>
    %cst_56 = arith.constant 2.000000e+00 : f32
    %85 = vector.broadcast %cst_56 : f32 to vector<16x8xf32>
    %86 = arith.mulf %85, %75 : vector<16x8xf32>
    %87 = arith.subf %84, %86 : vector<16x8xf32>
    %cst_57 = arith.constant 0.000000e+00 : f32
    %88 = vector.broadcast %cst_57 : f32 to vector<16x8xf32>
    %89 = arith.maximumf %87, %88 : vector<16x8xf32>
    %cst_58 = arith.constant 1.000000e+00 : f32
    %90 = vector.broadcast %cst_58 : f32 to vector<16x8xf32>
    %91 = arith.addf %90, %89 : vector<16x8xf32>
    %92 = tpu.reciprocal %91 {approx = true} : vector<16x8xf32> -> vector<16x8xf32>
    %cst_59 = arith.constant dense<0.000000e+00> : vector<16xf32>
    %93 = vector.multi_reduction <add>, %92, %cst_59 [1] : vector<16x8xf32> to vector<16xf32>
    %94 = vector.shape_cast %93 : vector<16xf32> to vector<16x1xf32>
    %95 = tpu.reciprocal %94 {approx = true} : vector<16x1xf32> -> vector<16x1xf32>
    %96 = vector.broadcast %95 : vector<16x1xf32> to vector<16x8xf32>
    %97 = arith.mulf %92, %96 : vector<16x8xf32>
    %c0_60 = arith.constant 0 : index
    %c0_61 = arith.constant 0 : index
    %98 = vector.load %arg20[%c0_60, %c0_61] : memref<16x32xbf16, #tpu.memory_space<vmem>>, vector<16x32xbf16>
    tpu.vector_store %arg20[%c0_60, %c0_61], %8 {strides = array<i32>} : memref<16x32xbf16, #tpu.memory_space<vmem>>, vector<16x32xbf16>,
    %c0_62 = arith.constant 0 : index
    %c0_63 = arith.constant 0 : index
    %99 = vector.load %arg21[%c0_62, %c0_63] : memref<16x32xbf16, #tpu.memory_space<vmem>>, vector<16x32xbf16>
    tpu.vector_store %arg21[%c0_62, %c0_63], %16 {strides = array<i32>} : memref<16x32xbf16, #tpu.memory_space<vmem>>, vector<16x32xbf16>,
    %c0_64 = arith.constant 0 : index
    %c0_65 = arith.constant 0 : index
    %100 = vector.load %arg22[%c0_64, %c0_65] : memref<16x64xbf16, #tpu.memory_space<vmem>>, vector<16x64xbf16>
    tpu.vector_store %arg22[%c0_64, %c0_65], %24 {strides = array<i32>} : memref<16x64xbf16, #tpu.memory_space<vmem>>, vector<16x64xbf16>,
    %cst_66 = arith.constant 0.000000e+00 : f32
    %101 = vector.broadcast %cst_66 : f32 to vector<16x40xf32>
    %102 = tpu.concatenate %73, %30, %31, %37, %97, %101 in 1 : vector<16x32xf32>, vector<16x16xf32>, vector<16x16xf32>, vector<16x16xf32>, vector<16x8xf32>, vector<16x40xf32> -> vector<16x128xf32>
    %c0_67 = arith.constant 0 : index
    %c0_68 = arith.constant 0 : index
    %103 = vector.load %arg23[%c0_67, %c0_68] : memref<16x128xf32, #tpu.memory_space<vmem>>, vector<16x128xf32>
    tpu.vector_store %arg23[%c0_67, %c0_68], %102 {strides = array<i32>} : memref<16x128xf32, #tpu.memory_space<vmem>>, vector<16x128xf32>,
    return
  }
  func.func @transform_0(%arg0: i32) -> (i32, i32) {
    %c0_i32 = arith.constant 0 : i32
    %c0_i32_0 = arith.constant 0 : i32
    return %arg0, %c0_i32 : i32, i32
  }
  func.func @transform_1(%arg0: i32) -> (i32, i32) {
    %c0_i32 = arith.constant 0 : i32
    %c0_i32_0 = arith.constant 0 : i32
    return %arg0, %c0_i32 : i32, i32
  }
  func.func @transform_2(%arg0: i32) -> (i32, i32) {
    %c0_i32 = arith.constant 0 : i32
    %c0_i32_0 = arith.constant 0 : i32
    %c0_i32_1 = arith.constant 0 : i32
    return %c0_i32, %c0_i32_0 : i32, i32
  }
  func.func @transform_3(%arg0: i32) -> (i32, i32) {
    %c0_i32 = arith.constant 0 : i32
    %c0_i32_0 = arith.constant 0 : i32
    %c0_i32_1 = arith.constant 0 : i32
    return %c0_i32, %c0_i32_0 : i32, i32
  }
  func.func @transform_4(%arg0: i32) -> (i32, i32) {
    %c0_i32 = arith.constant 0 : i32
    %c0_i32_0 = arith.constant 0 : i32
    %c0_i32_1 = arith.constant 0 : i32
    return %c0_i32, %c0_i32_0 : i32, i32
  }
  func.func @transform_5(%arg0: i32) -> (i32, i32) {
    %c0_i32 = arith.constant 0 : i32
    %c0_i32_0 = arith.constant 0 : i32
    %c0_i32_1 = arith.constant 0 : i32
    return %c0_i32, %c0_i32_0 : i32, i32
  }
  func.func @transform_6(%arg0: i32) -> (i32, i32) {
    %c0_i32 = arith.constant 0 : i32
    %c0_i32_0 = arith.constant 0 : i32
    %c0_i32_1 = arith.constant 0 : i32
    return %c0_i32, %c0_i32_0 : i32, i32
  }
  func.func @transform_7(%arg0: i32) -> (i32, i32) {
    %c0_i32 = arith.constant 0 : i32
    %c0_i32_0 = arith.constant 0 : i32
    %c0_i32_1 = arith.constant 0 : i32
    return %c0_i32, %c0_i32_0 : i32, i32
  }
  func.func @transform_8(%arg0: i32) -> (i32, i32) {
    %c0_i32 = arith.constant 0 : i32
    %c0_i32_0 = arith.constant 0 : i32
    %c0_i32_1 = arith.constant 0 : i32
    return %c0_i32, %c0_i32_0 : i32, i32
  }
  func.func @transform_9(%arg0: i32) -> (i32, i32) {
    %c0_i32 = arith.constant 0 : i32
    %c0_i32_0 = arith.constant 0 : i32
    %c0_i32_1 = arith.constant 0 : i32
    return %c0_i32, %c0_i32_0 : i32, i32
  }
  func.func @transform_10(%arg0: i32) -> (i32, i32) {
    %c0_i32 = arith.constant 0 : i32
    %c0_i32_0 = arith.constant 0 : i32
    %c0_i32_1 = arith.constant 0 : i32
    return %c0_i32, %c0_i32_0 : i32, i32
  }
  func.func @transform_11(%arg0: i32) -> (i32, i32) {
    %c0_i32 = arith.constant 0 : i32
    %c0_i32_0 = arith.constant 0 : i32
    %c0_i32_1 = arith.constant 0 : i32
    return %c0_i32, %c0_i32_0 : i32, i32
  }
  func.func @transform_12(%arg0: i32) -> (i32, i32) {
    %c0_i32 = arith.constant 0 : i32
    %c0_i32_0 = arith.constant 0 : i32
    %c0_i32_1 = arith.constant 0 : i32
    return %c0_i32, %c0_i32_0 : i32, i32
  }
  func.func @transform_13(%arg0: i32) -> (i32, i32) {
    %c0_i32 = arith.constant 0 : i32
    %c0_i32_0 = arith.constant 0 : i32
    %c0_i32_1 = arith.constant 0 : i32
    return %c0_i32, %c0_i32_0 : i32, i32
  }
  func.func @transform_14(%arg0: i32) -> (i32, i32) {
    %c0_i32 = arith.constant 0 : i32
    %c0_i32_0 = arith.constant 0 : i32
    %c0_i32_1 = arith.constant 0 : i32
    return %c0_i32, %c0_i32_0 : i32, i32
  }
  func.func @transform_15(%arg0: i32) -> (i32, i32) {
    %c0_i32 = arith.constant 0 : i32
    %c0_i32_0 = arith.constant 0 : i32
    %c0_i32_1 = arith.constant 0 : i32
    return %c0_i32, %c0_i32_0 : i32, i32
  }
  func.func @transform_16(%arg0: i32) -> (i32, i32) {
    %c0_i32 = arith.constant 0 : i32
    %c0_i32_0 = arith.constant 0 : i32
    %c0_i32_1 = arith.constant 0 : i32
    return %c0_i32, %c0_i32_0 : i32, i32
  }
  func.func @transform_17(%arg0: i32) -> (i32, i32) {
    %c0_i32 = arith.constant 0 : i32
    %c0_i32_0 = arith.constant 0 : i32
    %c0_i32_1 = arith.constant 0 : i32
    return %c0_i32, %c0_i32_0 : i32, i32
  }
  func.func @transform_18(%arg0: i32) -> (i32, i32) {
    %c0_i32 = arith.constant 0 : i32
    %c0_i32_0 = arith.constant 0 : i32
    %c0_i32_1 = arith.constant 0 : i32
    return %c0_i32, %c0_i32_0 : i32, i32
  }
  func.func @transform_19(%arg0: i32) -> (i32, i32) {
    %c0_i32 = arith.constant 0 : i32
    %c0_i32_0 = arith.constant 0 : i32
    return %arg0, %c0_i32 : i32, i32
  }
  func.func @transform_20(%arg0: i32) -> (i32, i32) {
    %c0_i32 = arith.constant 0 : i32
    %c0_i32_0 = arith.constant 0 : i32
    return %arg0, %c0_i32 : i32, i32
  }
  func.func @transform_21(%arg0: i32) -> (i32, i32) {
    %c0_i32 = arith.constant 0 : i32
    %c0_i32_0 = arith.constant 0 : i32
    return %arg0, %c0_i32 : i32, i32
  }
  func.func @transform_22(%arg0: i32) -> (i32, i32) {
    %c0_i32 = arith.constant 0 : i32
    %c0_i32_0 = arith.constant 0 : i32
    return %arg0, %c0_i32 : i32, i32
  }
}

module attributes {stable_mosaic.version = 11 : i64} {
  func.func @kernel(%arg0: i32, %arg1: i32, %arg2: memref<16x16xbf16, #tpu.memory_space<vmem>>, %arg3: memref<16x32xbf16, #tpu.memory_space<vmem>>, %arg4: memref<16x32xbf16, #tpu.memory_space<vmem>>, %arg5: memref<32x32xbf16, #tpu.memory_space<vmem>>, %arg6: memref<16x32xbf16, #tpu.memory_space<vmem>>, %arg7: memref<16x32xf32, #tpu.memory_space<vmem>>) attributes {dimension_semantics = [#tpu.dimension_semantics<parallel>, #tpu.dimension_semantics<arbitrary>], iteration_bounds = array<i64: 1, 1>, scalar_prefetch = 0 : i64, scratch_operands = 1 : i64, tpu.core_type = #tpu.core_type<tc>, window_params = [{transform_indices = @transform_0, window_bounds = array<i64: 16, 16>}, {transform_indices = @transform_1, window_bounds = array<i64: 16, 32>}, {transform_indices = @transform_2, window_bounds = array<i64: 16, 32>}, {pipeline_mode = #tpu.pipeline_mode<synchronous>, transform_indices = @transform_3, window_bounds = array<i64: 32, 32>}, {transform_indices = @transform_4, window_bounds = array<i64: 16, 32>}]} {
    %c0_i32 = arith.constant 0 : i32
    %0 = arith.cmpi eq, %arg1, %c0_i32 : i32
    %1 = arith.extui %0 : i1 to i32
    %c0_i32_0 = arith.constant 0 : i32
    %2 = arith.cmpi ne, %1, %c0_i32_0 : i32
    scf.if %2 {
      %cst_17 = arith.constant 0.000000e+00 : f32
      %24 = vector.broadcast %cst_17 : f32 to vector<16x32xf32>
      %c0_18 = arith.constant 0 : index
      %c0_19 = arith.constant 0 : index
      %25 = vector.load %arg7[%c0_18, %c0_19] : memref<16x32xf32, #tpu.memory_space<vmem>>, vector<16x32xf32>
      tpu.vector_store %arg7[%c0_18, %c0_19], %24 {strides = array<i32>} : memref<16x32xf32, #tpu.memory_space<vmem>>, vector<16x32xf32>,
    } else {
    }
    %c0 = arith.constant 0 : index
    %c0_1 = arith.constant 0 : index
    %3 = vector.load %arg3[%c0, %c0_1] : memref<16x32xbf16, #tpu.memory_space<vmem>>, vector<16x32xbf16>
    %4 = arith.extf %3 : vector<16x32xbf16> to vector<16x32xf32>
    %cst = arith.constant 3.000000e-01 : f32
    %5 = vector.broadcast %cst : f32 to vector<16x32xf32>
    %6 = arith.mulf %5, %4 : vector<16x32xf32>
    %c0_2 = arith.constant 0 : index
    %c0_3 = arith.constant 0 : index
    %7 = vector.load %arg4[%c0_2, %c0_3] : memref<16x32xbf16, #tpu.memory_space<vmem>>, vector<16x32xbf16>
    %8 = arith.extf %7 : vector<16x32xbf16> to vector<16x32xf32>
    %cst_4 = arith.constant 0.699999988 : f32
    %9 = vector.broadcast %cst_4 : f32 to vector<16x32xf32>
    %10 = arith.mulf %9, %8 : vector<16x32xf32>
    %11 = arith.addf %6, %10 : vector<16x32xf32>
    %12 = arith.truncf %11 : vector<16x32xf32> to vector<16x32xbf16>
    %c0_5 = arith.constant 0 : index
    %c0_6 = arith.constant 0 : index
    %13 = vector.load %arg5[%c0_5, %c0_6] : memref<32x32xbf16, #tpu.memory_space<vmem>>, vector<32x32xbf16>
    %cst_7 = arith.constant dense<0.000000e+00> : vector<16x32xf32>
    %14 = tpu.matmul %12, %13, %cst_7 {dimension_numbers = #tpu.dot_dimension_numbers<[1], [0], [0], [1], [0, 0, 1, 1], [], []>} : vector<16x32xbf16>, vector<32x32xbf16>, vector<16x32xf32> -> vector<16x32xf32>
    %15 = arith.truncf %14 : vector<16x32xf32> to vector<16x32xbf16>
    %c0_8 = arith.constant 0 : index
    %c0_9 = arith.constant 0 : index
    %16 = vector.load %arg7[%c0_8, %c0_9] : memref<16x32xf32, #tpu.memory_space<vmem>>, vector<16x32xf32>
    %c0_10 = arith.constant 0 : index
    %c0_11 = arith.constant 0 : index
    %17 = vector.load %arg2[%c0_10, %c0_11] : memref<16x16xbf16, #tpu.memory_space<vmem>>, vector<16x16xbf16>
    %cst_12 = arith.constant dense<0.000000e+00> : vector<16x32xf32>
    %18 = tpu.matmul %17, %15, %cst_12 {dimension_numbers = #tpu.dot_dimension_numbers<[1], [0], [0], [1], [0, 0, 1, 1], [], []>} : vector<16x16xbf16>, vector<16x32xbf16>, vector<16x32xf32> -> vector<16x32xf32>
    %19 = arith.addf %16, %18 : vector<16x32xf32>
    %c0_13 = arith.constant 0 : index
    %c0_14 = arith.constant 0 : index
    %20 = vector.load %arg7[%c0_13, %c0_14] : memref<16x32xf32, #tpu.memory_space<vmem>>, vector<16x32xf32>
    tpu.vector_store %arg7[%c0_13, %c0_14], %19 {strides = array<i32>} : memref<16x32xf32, #tpu.memory_space<vmem>>, vector<16x32xf32>,
    %c0_i32_15 = arith.constant 0 : i32
    %21 = arith.cmpi eq, %arg1, %c0_i32_15 : i32
    %22 = arith.extui %21 : i1 to i32
    %c0_i32_16 = arith.constant 0 : i32
    %23 = arith.cmpi ne, %22, %c0_i32_16 : i32
    scf.if %23 {
      %c0_17 = arith.constant 0 : index
      %c0_18 = arith.constant 0 : index
      %24 = vector.load %arg7[%c0_17, %c0_18] : memref<16x32xf32, #tpu.memory_space<vmem>>, vector<16x32xf32>
      %cst_19 = arith.constant 0.000000e+00 : f32
      %25 = vector.broadcast %cst_19 : f32 to vector<16x32xf32>
      %26 = arith.maximumf %24, %25 : vector<16x32xf32>
      %27 = arith.truncf %26 : vector<16x32xf32> to vector<16x32xbf16>
      %c0_20 = arith.constant 0 : index
      %c0_21 = arith.constant 0 : index
      %28 = vector.load %arg6[%c0_20, %c0_21] : memref<16x32xbf16, #tpu.memory_space<vmem>>, vector<16x32xbf16>
      tpu.vector_store %arg6[%c0_20, %c0_21], %27 {strides = array<i32>} : memref<16x32xbf16, #tpu.memory_space<vmem>>, vector<16x32xbf16>,
    } else {
    }
    return
  }
  func.func @transform_0(%arg0: i32, %arg1: i32) -> (i32, i32) {
    %c0_i32 = arith.constant 0 : i32
    return %arg0, %arg1 : i32, i32
  }
  func.func @transform_1(%arg0: i32, %arg1: i32) -> (i32, i32) {
    %c0_i32 = arith.constant 0 : i32
    %c0_i32_0 = arith.constant 0 : i32
    return %arg1, %c0_i32 : i32, i32
  }
  func.func @transform_2(%arg0: i32, %arg1: i32) -> (i32, i32) {
    %c0_i32 = arith.constant 0 : i32
    %c0_i32_0 = arith.constant 0 : i32
    return %arg1, %c0_i32 : i32, i32
  }
  func.func @transform_3(%arg0: i32, %arg1: i32) -> (i32, i32) {
    %c0_i32 = arith.constant 0 : i32
    %c0_i32_0 = arith.constant 0 : i32
    %c0_i32_1 = arith.constant 0 : i32
    return %c0_i32, %c0_i32_0 : i32, i32
  }
  func.func @transform_4(%arg0: i32, %arg1: i32) -> (i32, i32) {
    %c0_i32 = arith.constant 0 : i32
    %c0_i32_0 = arith.constant 0 : i32
    return %arg0, %c0_i32 : i32, i32
  }
}

module attributes {stable_mosaic.version = 11 : i64} {
  func.func @kernel(%arg0: i32, %arg1: i32, %arg2: memref<16x16xbf16, #tpu.memory_space<vmem>>, %arg3: memref<16x32xbf16, #tpu.memory_space<vmem>>, %arg4: memref<16x32xbf16, #tpu.memory_space<vmem>>, %arg5: memref<32x64xbf16, #tpu.memory_space<vmem>>, %arg6: memref<16x64xbf16, #tpu.memory_space<vmem>>, %arg7: memref<16x32xf32, #tpu.memory_space<vmem>>) attributes {dimension_semantics = [#tpu.dimension_semantics<parallel>, #tpu.dimension_semantics<arbitrary>], iteration_bounds = array<i64: 1, 1>, scalar_prefetch = 0 : i64, scratch_operands = 1 : i64, tpu.core_type = #tpu.core_type<tc>, window_params = [{transform_indices = @transform_0, window_bounds = array<i64: 16, 16>}, {transform_indices = @transform_1, window_bounds = array<i64: 16, 32>}, {transform_indices = @transform_2, window_bounds = array<i64: 16, 32>}, {pipeline_mode = #tpu.pipeline_mode<synchronous>, transform_indices = @transform_3, window_bounds = array<i64: 32, 64>}, {transform_indices = @transform_4, window_bounds = array<i64: 16, 64>}]} {
    %c0_i32 = arith.constant 0 : i32
    %0 = arith.cmpi eq, %arg1, %c0_i32 : i32
    %1 = arith.extui %0 : i1 to i32
    %c0_i32_0 = arith.constant 0 : i32
    %2 = arith.cmpi ne, %1, %c0_i32_0 : i32
    scf.if %2 {
      %cst_14 = arith.constant 0.000000e+00 : f32
      %21 = vector.broadcast %cst_14 : f32 to vector<16x32xf32>
      %c0_15 = arith.constant 0 : index
      %c0_16 = arith.constant 0 : index
      %22 = vector.load %arg7[%c0_15, %c0_16] : memref<16x32xf32, #tpu.memory_space<vmem>>, vector<16x32xf32>
      tpu.vector_store %arg7[%c0_15, %c0_16], %21 {strides = array<i32>} : memref<16x32xf32, #tpu.memory_space<vmem>>, vector<16x32xf32>,
    } else {
    }
    %c0 = arith.constant 0 : index
    %c0_1 = arith.constant 0 : index
    %3 = vector.load %arg3[%c0, %c0_1] : memref<16x32xbf16, #tpu.memory_space<vmem>>, vector<16x32xbf16>
    %4 = arith.extf %3 : vector<16x32xbf16> to vector<16x32xf32>
    %cst = arith.constant 3.000000e-01 : f32
    %5 = vector.broadcast %cst : f32 to vector<16x32xf32>
    %6 = arith.mulf %5, %4 : vector<16x32xf32>
    %c0_2 = arith.constant 0 : index
    %c0_3 = arith.constant 0 : index
    %7 = vector.load %arg4[%c0_2, %c0_3] : memref<16x32xbf16, #tpu.memory_space<vmem>>, vector<16x32xbf16>
    %8 = arith.extf %7 : vector<16x32xbf16> to vector<16x32xf32>
    %cst_4 = arith.constant 0.699999988 : f32
    %9 = vector.broadcast %cst_4 : f32 to vector<16x32xf32>
    %10 = arith.mulf %9, %8 : vector<16x32xf32>
    %11 = arith.addf %6, %10 : vector<16x32xf32>
    %12 = arith.truncf %11 : vector<16x32xf32> to vector<16x32xbf16>
    %c0_5 = arith.constant 0 : index
    %c0_6 = arith.constant 0 : index
    %13 = vector.load %arg7[%c0_5, %c0_6] : memref<16x32xf32, #tpu.memory_space<vmem>>, vector<16x32xf32>
    %c0_7 = arith.constant 0 : index
    %c0_8 = arith.constant 0 : index
    %14 = vector.load %arg2[%c0_7, %c0_8] : memref<16x16xbf16, #tpu.memory_space<vmem>>, vector<16x16xbf16>
    %cst_9 = arith.constant dense<0.000000e+00> : vector<16x32xf32>
    %15 = tpu.matmul %14, %12, %cst_9 {dimension_numbers = #tpu.dot_dimension_numbers<[1], [0], [0], [1], [0, 0, 1, 1], [], []>} : vector<16x16xbf16>, vector<16x32xbf16>, vector<16x32xf32> -> vector<16x32xf32>
    %16 = arith.addf %13, %15 : vector<16x32xf32>
    %c0_10 = arith.constant 0 : index
    %c0_11 = arith.constant 0 : index
    %17 = vector.load %arg7[%c0_10, %c0_11] : memref<16x32xf32, #tpu.memory_space<vmem>>, vector<16x32xf32>
    tpu.vector_store %arg7[%c0_10, %c0_11], %16 {strides = array<i32>} : memref<16x32xf32, #tpu.memory_space<vmem>>, vector<16x32xf32>,
    %c0_i32_12 = arith.constant 0 : i32
    %18 = arith.cmpi eq, %arg1, %c0_i32_12 : i32
    %19 = arith.extui %18 : i1 to i32
    %c0_i32_13 = arith.constant 0 : i32
    %20 = arith.cmpi ne, %19, %c0_i32_13 : i32
    scf.if %20 {
      %c0_14 = arith.constant 0 : index
      %c0_15 = arith.constant 0 : index
      %21 = vector.load %arg7[%c0_14, %c0_15] : memref<16x32xf32, #tpu.memory_space<vmem>>, vector<16x32xf32>
      %22 = arith.truncf %21 : vector<16x32xf32> to vector<16x32xbf16>
      %c0_16 = arith.constant 0 : index
      %c0_17 = arith.constant 0 : index
      %23 = vector.load %arg5[%c0_16, %c0_17] : memref<32x64xbf16, #tpu.memory_space<vmem>>, vector<32x64xbf16>
      %cst_18 = arith.constant dense<0.000000e+00> : vector<16x64xf32>
      %24 = tpu.matmul %22, %23, %cst_18 {dimension_numbers = #tpu.dot_dimension_numbers<[1], [0], [0], [1], [0, 0, 1, 1], [], []>} : vector<16x32xbf16>, vector<32x64xbf16>, vector<16x64xf32> -> vector<16x64xf32>
      %cst_19 = arith.constant 0.000000e+00 : f32
      %25 = vector.broadcast %cst_19 : f32 to vector<16x64xf32>
      %26 = arith.maximumf %24, %25 : vector<16x64xf32>
      %27 = arith.truncf %26 : vector<16x64xf32> to vector<16x64xbf16>
      %c0_20 = arith.constant 0 : index
      %c0_21 = arith.constant 0 : index
      %28 = vector.load %arg6[%c0_20, %c0_21] : memref<16x64xbf16, #tpu.memory_space<vmem>>, vector<16x64xbf16>
      tpu.vector_store %arg6[%c0_20, %c0_21], %27 {strides = array<i32>} : memref<16x64xbf16, #tpu.memory_space<vmem>>, vector<16x64xbf16>,
    } else {
    }
    return
  }
  func.func @transform_0(%arg0: i32, %arg1: i32) -> (i32, i32) {
    %c0_i32 = arith.constant 0 : i32
    return %arg0, %arg1 : i32, i32
  }
  func.func @transform_1(%arg0: i32, %arg1: i32) -> (i32, i32) {
    %c0_i32 = arith.constant 0 : i32
    %c0_i32_0 = arith.constant 0 : i32
    return %arg1, %c0_i32 : i32, i32
  }
  func.func @transform_2(%arg0: i32, %arg1: i32) -> (i32, i32) {
    %c0_i32 = arith.constant 0 : i32
    %c0_i32_0 = arith.constant 0 : i32
    return %arg1, %c0_i32 : i32, i32
  }
  func.func @transform_3(%arg0: i32, %arg1: i32) -> (i32, i32) {
    %c0_i32 = arith.constant 0 : i32
    %c0_i32_0 = arith.constant 0 : i32
    %c0_i32_1 = arith.constant 0 : i32
    return %c0_i32, %c0_i32_0 : i32, i32
  }
  func.func @transform_4(%arg0: i32, %arg1: i32) -> (i32, i32) {
    %c0_i32 = arith.constant 0 : i32
    %c0_i32_0 = arith.constant 0 : i32
    return %arg0, %c0_i32 : i32, i32
  }
}

module attributes {stable_mosaic.version = 11 : i64} {
  func.func @kernel(%arg0: i32, %arg1: i32, %arg2: memref<16x16xbf16, #tpu.memory_space<vmem>>, %arg3: memref<16x64xbf16, #tpu.memory_space<vmem>>, %arg4: memref<16x64xbf16, #tpu.memory_space<vmem>>, %arg5: memref<64x16xbf16, #tpu.memory_space<vmem>>, %arg6: memref<16x16xbf16, #tpu.memory_space<vmem>>, %arg7: memref<16x16xf32, #tpu.memory_space<vmem>>) attributes {dimension_semantics = [#tpu.dimension_semantics<parallel>, #tpu.dimension_semantics<arbitrary>], iteration_bounds = array<i64: 1, 1>, scalar_prefetch = 0 : i64, scratch_operands = 1 : i64, tpu.core_type = #tpu.core_type<tc>, window_params = [{transform_indices = @transform_0, window_bounds = array<i64: 16, 16>}, {transform_indices = @transform_1, window_bounds = array<i64: 16, 64>}, {transform_indices = @transform_2, window_bounds = array<i64: 16, 64>}, {pipeline_mode = #tpu.pipeline_mode<synchronous>, transform_indices = @transform_3, window_bounds = array<i64: 64, 16>}, {transform_indices = @transform_4, window_bounds = array<i64: 16, 16>}]} {
    %c0_i32 = arith.constant 0 : i32
    %0 = arith.cmpi eq, %arg1, %c0_i32 : i32
    %1 = arith.extui %0 : i1 to i32
    %c0_i32_0 = arith.constant 0 : i32
    %2 = arith.cmpi ne, %1, %c0_i32_0 : i32
    scf.if %2 {
      %cst_17 = arith.constant 0.000000e+00 : f32
      %24 = vector.broadcast %cst_17 : f32 to vector<16x16xf32>
      %c0_18 = arith.constant 0 : index
      %c0_19 = arith.constant 0 : index
      %25 = vector.load %arg7[%c0_18, %c0_19] : memref<16x16xf32, #tpu.memory_space<vmem>>, vector<16x16xf32>
      tpu.vector_store %arg7[%c0_18, %c0_19], %24 {strides = array<i32>} : memref<16x16xf32, #tpu.memory_space<vmem>>, vector<16x16xf32>,
    } else {
    }
    %c0 = arith.constant 0 : index
    %c0_1 = arith.constant 0 : index
    %3 = vector.load %arg3[%c0, %c0_1] : memref<16x64xbf16, #tpu.memory_space<vmem>>, vector<16x64xbf16>
    %4 = arith.extf %3 : vector<16x64xbf16> to vector<16x64xf32>
    %cst = arith.constant 3.000000e-01 : f32
    %5 = vector.broadcast %cst : f32 to vector<16x64xf32>
    %6 = arith.mulf %5, %4 : vector<16x64xf32>
    %c0_2 = arith.constant 0 : index
    %c0_3 = arith.constant 0 : index
    %7 = vector.load %arg4[%c0_2, %c0_3] : memref<16x64xbf16, #tpu.memory_space<vmem>>, vector<16x64xbf16>
    %8 = arith.extf %7 : vector<16x64xbf16> to vector<16x64xf32>
    %cst_4 = arith.constant 0.699999988 : f32
    %9 = vector.broadcast %cst_4 : f32 to vector<16x64xf32>
    %10 = arith.mulf %9, %8 : vector<16x64xf32>
    %11 = arith.addf %6, %10 : vector<16x64xf32>
    %12 = arith.truncf %11 : vector<16x64xf32> to vector<16x64xbf16>
    %c0_5 = arith.constant 0 : index
    %c0_6 = arith.constant 0 : index
    %13 = vector.load %arg5[%c0_5, %c0_6] : memref<64x16xbf16, #tpu.memory_space<vmem>>, vector<64x16xbf16>
    %cst_7 = arith.constant dense<0.000000e+00> : vector<16x16xf32>
    %14 = tpu.matmul %12, %13, %cst_7 {dimension_numbers = #tpu.dot_dimension_numbers<[1], [0], [0], [1], [0, 0, 1, 1], [], []>} : vector<16x64xbf16>, vector<64x16xbf16>, vector<16x16xf32> -> vector<16x16xf32>
    %15 = arith.truncf %14 : vector<16x16xf32> to vector<16x16xbf16>
    %c0_8 = arith.constant 0 : index
    %c0_9 = arith.constant 0 : index
    %16 = vector.load %arg7[%c0_8, %c0_9] : memref<16x16xf32, #tpu.memory_space<vmem>>, vector<16x16xf32>
    %c0_10 = arith.constant 0 : index
    %c0_11 = arith.constant 0 : index
    %17 = vector.load %arg2[%c0_10, %c0_11] : memref<16x16xbf16, #tpu.memory_space<vmem>>, vector<16x16xbf16>
    %cst_12 = arith.constant dense<0.000000e+00> : vector<16x16xf32>
    %18 = tpu.matmul %17, %15, %cst_12 {dimension_numbers = #tpu.dot_dimension_numbers<[1], [0], [0], [1], [0, 0, 1, 1], [], []>} : vector<16x16xbf16>, vector<16x16xbf16>, vector<16x16xf32> -> vector<16x16xf32>
    %19 = arith.addf %16, %18 : vector<16x16xf32>
    %c0_13 = arith.constant 0 : index
    %c0_14 = arith.constant 0 : index
    %20 = vector.load %arg7[%c0_13, %c0_14] : memref<16x16xf32, #tpu.memory_space<vmem>>, vector<16x16xf32>
    tpu.vector_store %arg7[%c0_13, %c0_14], %19 {strides = array<i32>} : memref<16x16xf32, #tpu.memory_space<vmem>>, vector<16x16xf32>,
    %c0_i32_15 = arith.constant 0 : i32
    %21 = arith.cmpi eq, %arg1, %c0_i32_15 : i32
    %22 = arith.extui %21 : i1 to i32
    %c0_i32_16 = arith.constant 0 : i32
    %23 = arith.cmpi ne, %22, %c0_i32_16 : i32
    scf.if %23 {
      %c0_17 = arith.constant 0 : index
      %c0_18 = arith.constant 0 : index
      %24 = vector.load %arg7[%c0_17, %c0_18] : memref<16x16xf32, #tpu.memory_space<vmem>>, vector<16x16xf32>
      %cst_19 = arith.constant 0.000000e+00 : f32
      %25 = vector.broadcast %cst_19 : f32 to vector<16x16xf32>
      %26 = arith.maximumf %24, %25 : vector<16x16xf32>
      %27 = arith.truncf %26 : vector<16x16xf32> to vector<16x16xbf16>
      %c0_20 = arith.constant 0 : index
      %c0_21 = arith.constant 0 : index
      %28 = vector.load %arg6[%c0_20, %c0_21] : memref<16x16xbf16, #tpu.memory_space<vmem>>, vector<16x16xbf16>
      tpu.vector_store %arg6[%c0_20, %c0_21], %27 {strides = array<i32>} : memref<16x16xbf16, #tpu.memory_space<vmem>>, vector<16x16xbf16>,
    } else {
    }
    return
  }
  func.func @transform_0(%arg0: i32, %arg1: i32) -> (i32, i32) {
    %c0_i32 = arith.constant 0 : i32
    return %arg0, %arg1 : i32, i32
  }
  func.func @transform_1(%arg0: i32, %arg1: i32) -> (i32, i32) {
    %c0_i32 = arith.constant 0 : i32
    %c0_i32_0 = arith.constant 0 : i32
    return %arg1, %c0_i32 : i32, i32
  }
  func.func @transform_2(%arg0: i32, %arg1: i32) -> (i32, i32) {
    %c0_i32 = arith.constant 0 : i32
    %c0_i32_0 = arith.constant 0 : i32
    return %arg1, %c0_i32 : i32, i32
  }
  func.func @transform_3(%arg0: i32, %arg1: i32) -> (i32, i32) {
    %c0_i32 = arith.constant 0 : i32
    %c0_i32_0 = arith.constant 0 : i32
    %c0_i32_1 = arith.constant 0 : i32
    return %c0_i32, %c0_i32_0 : i32, i32
  }
  func.func @transform_4(%arg0: i32, %arg1: i32) -> (i32, i32) {
    %c0_i32 = arith.constant 0 : i32
    %c0_i32_0 = arith.constant 0 : i32
    return %arg0, %c0_i32 : i32, i32
  }
}

module attributes {stable_mosaic.version = 11 : i64} {
  func.func @kernel(%arg0: i32, %arg1: i32, %arg2: memref<16x16xbf16, #tpu.memory_space<vmem>>, %arg3: memref<16x16xbf16, #tpu.memory_space<vmem>>, %arg4: memref<16x16xf32, #tpu.memory_space<vmem>>, %arg5: memref<16x8xbf16, #tpu.memory_space<vmem>>, %arg6: memref<16x128xf32, #tpu.memory_space<vmem>>, %arg7: memref<16x8xf32, #tpu.memory_space<vmem>>) attributes {dimension_semantics = [#tpu.dimension_semantics<parallel>, #tpu.dimension_semantics<arbitrary>], iteration_bounds = array<i64: 1, 1>, scalar_prefetch = 0 : i64, scratch_operands = 1 : i64, tpu.core_type = #tpu.core_type<tc>, window_params = [{transform_indices = @transform_0, window_bounds = array<i64: 16, 16>}, {transform_indices = @transform_1, window_bounds = array<i64: 16, 16>}, {transform_indices = @transform_2, window_bounds = array<i64: 16, 16>}, {pipeline_mode = #tpu.pipeline_mode<synchronous>, transform_indices = @transform_3, window_bounds = array<i64: 16, 8>}, {transform_indices = @transform_4, window_bounds = array<i64: 16, 128>}]} {
    %c0_i32 = arith.constant 0 : i32
    %0 = arith.cmpi eq, %arg1, %c0_i32 : i32
    %1 = arith.extui %0 : i1 to i32
    %c0_i32_0 = arith.constant 0 : i32
    %2 = arith.cmpi ne, %1, %c0_i32_0 : i32
    scf.if %2 {
      %cst_17 = arith.constant 0.000000e+00 : f32
      %23 = vector.broadcast %cst_17 : f32 to vector<16x8xf32>
      %c0_18 = arith.constant 0 : index
      %c0_19 = arith.constant 0 : index
      %24 = vector.load %arg7[%c0_18, %c0_19] : memref<16x8xf32, #tpu.memory_space<vmem>>, vector<16x8xf32>
      tpu.vector_store %arg7[%c0_18, %c0_19], %23 {strides = array<i32>} : memref<16x8xf32, #tpu.memory_space<vmem>>, vector<16x8xf32>,
    } else {
    }
    %c0 = arith.constant 0 : index
    %c0_1 = arith.constant 0 : index
    %3 = vector.load %arg3[%c0, %c0_1] : memref<16x16xbf16, #tpu.memory_space<vmem>>, vector<16x16xbf16>
    %4 = arith.extf %3 : vector<16x16xbf16> to vector<16x16xf32>
    %cst = arith.constant 3.000000e-01 : f32
    %5 = vector.broadcast %cst : f32 to vector<16x16xf32>
    %6 = arith.mulf %5, %4 : vector<16x16xf32>
    %c0_2 = arith.constant 0 : index
    %c0_3 = arith.constant 0 : index
    %7 = vector.load %arg4[%c0_2, %c0_3] : memref<16x16xf32, #tpu.memory_space<vmem>>, vector<16x16xf32>
    %cst_4 = arith.constant 0.699999988 : f32
    %8 = vector.broadcast %cst_4 : f32 to vector<16x16xf32>
    %9 = arith.mulf %8, %7 : vector<16x16xf32>
    %10 = arith.addf %6, %9 : vector<16x16xf32>
    %11 = arith.truncf %10 : vector<16x16xf32> to vector<16x16xbf16>
    %c0_5 = arith.constant 0 : index
    %c0_6 = arith.constant 0 : index
    %12 = vector.load %arg5[%c0_5, %c0_6] : memref<16x8xbf16, #tpu.memory_space<vmem>>, vector<16x8xbf16>
    %cst_7 = arith.constant dense<0.000000e+00> : vector<16x8xf32>
    %13 = tpu.matmul %11, %12, %cst_7 {dimension_numbers = #tpu.dot_dimension_numbers<[1], [0], [0], [1], [0, 0, 1, 1], [], []>} : vector<16x16xbf16>, vector<16x8xbf16>, vector<16x8xf32> -> vector<16x8xf32>
    %14 = arith.truncf %13 : vector<16x8xf32> to vector<16x8xbf16>
    %c0_8 = arith.constant 0 : index
    %c0_9 = arith.constant 0 : index
    %15 = vector.load %arg7[%c0_8, %c0_9] : memref<16x8xf32, #tpu.memory_space<vmem>>, vector<16x8xf32>
    %c0_10 = arith.constant 0 : index
    %c0_11 = arith.constant 0 : index
    %16 = vector.load %arg2[%c0_10, %c0_11] : memref<16x16xbf16, #tpu.memory_space<vmem>>, vector<16x16xbf16>
    %cst_12 = arith.constant dense<0.000000e+00> : vector<16x8xf32>
    %17 = tpu.matmul %16, %14, %cst_12 {dimension_numbers = #tpu.dot_dimension_numbers<[1], [0], [0], [1], [0, 0, 1, 1], [], []>} : vector<16x16xbf16>, vector<16x8xbf16>, vector<16x8xf32> -> vector<16x8xf32>
    %18 = arith.addf %15, %17 : vector<16x8xf32>
    %c0_13 = arith.constant 0 : index
    %c0_14 = arith.constant 0 : index
    %19 = vector.load %arg7[%c0_13, %c0_14] : memref<16x8xf32, #tpu.memory_space<vmem>>, vector<16x8xf32>
    tpu.vector_store %arg7[%c0_13, %c0_14], %18 {strides = array<i32>} : memref<16x8xf32, #tpu.memory_space<vmem>>, vector<16x8xf32>,
    %c0_i32_15 = arith.constant 0 : i32
    %20 = arith.cmpi eq, %arg1, %c0_i32_15 : i32
    %21 = arith.extui %20 : i1 to i32
    %c0_i32_16 = arith.constant 0 : i32
    %22 = arith.cmpi ne, %21, %c0_i32_16 : i32
    scf.if %22 {
      %c0_17 = arith.constant 0 : index
      %c0_18 = arith.constant 0 : index
      %23 = vector.load %arg7[%c0_17, %c0_18] : memref<16x8xf32, #tpu.memory_space<vmem>>, vector<16x8xf32>
      %cst_19 = arith.constant dense<0xFF800000> : vector<16xf32>
      %24 = vector.multi_reduction <maximumf>, %23, %cst_19 [1] : vector<16x8xf32> to vector<16xf32>
      %25 = vector.shape_cast %24 : vector<16xf32> to vector<16x1xf32>
      %26 = vector.broadcast %25 : vector<16x1xf32> to vector<16x8xf32>
      %27 = arith.subf %23, %26 : vector<16x8xf32>
      %28 = math.exp %27 : vector<16x8xf32>
      %cst_20 = arith.constant dense<0.000000e+00> : vector<16xf32>
      %29 = vector.multi_reduction <add>, %28, %cst_20 [1] : vector<16x8xf32> to vector<16xf32>
      %30 = vector.shape_cast %29 : vector<16xf32> to vector<16x1xf32>
      %31 = tpu.reciprocal %30 {approx = true} : vector<16x1xf32> -> vector<16x1xf32>
      %32 = vector.broadcast %31 : vector<16x1xf32> to vector<16x8xf32>
      %33 = arith.mulf %28, %32 : vector<16x8xf32>
      %cst_21 = arith.constant 0.000000e+00 : f32
      %34 = vector.broadcast %cst_21 : f32 to vector<16x120xf32>
      %35 = tpu.concatenate %33, %34 in 1 : vector<16x8xf32>, vector<16x120xf32> -> vector<16x128xf32>
      %c0_22 = arith.constant 0 : index
      %c0_23 = arith.constant 0 : index
      %36 = vector.load %arg6[%c0_22, %c0_23] : memref<16x128xf32, #tpu.memory_space<vmem>>, vector<16x128xf32>
      tpu.vector_store %arg6[%c0_22, %c0_23], %35 {strides = array<i32>} : memref<16x128xf32, #tpu.memory_space<vmem>>, vector<16x128xf32>,
    } else {
    }
    return
  }
  func.func @transform_0(%arg0: i32, %arg1: i32) -> (i32, i32) {
    %c0_i32 = arith.constant 0 : i32
    return %arg0, %arg1 : i32, i32
  }
  func.func @transform_1(%arg0: i32, %arg1: i32) -> (i32, i32) {
    %c0_i32 = arith.constant 0 : i32
    %c0_i32_0 = arith.constant 0 : i32
    return %arg1, %c0_i32 : i32, i32
  }
  func.func @transform_2(%arg0: i32, %arg1: i32) -> (i32, i32) {
    %c0_i32 = arith.constant 0 : i32
    %c0_i32_0 = arith.constant 0 : i32
    return %arg1, %c0_i32 : i32, i32
  }
  func.func @transform_3(%arg0: i32, %arg1: i32) -> (i32, i32) {
    %c0_i32 = arith.constant 0 : i32
    %c0_i32_0 = arith.constant 0 : i32
    %c0_i32_1 = arith.constant 0 : i32
    return %c0_i32, %c0_i32_0 : i32, i32
  }
  func.func @transform_4(%arg0: i32, %arg1: i32) -> (i32, i32) {
    %c0_i32 = arith.constant 0 : i32
    %c0_i32_0 = arith.constant 0 : i32
    return %arg0, %c0_i32 : i32, i32
  }
}

</mosaic_0001>

<bundles_post_ra>
// kernel: vade_forward.9
= control target key start
LH: loop header
LB: loop body
LE: loop exit
PB: predicated region body
PF: predicated region fallthrough
CT: control target
= control target key end

     0   :  { %vm22_vm0 = vcmask 261120   ;;  %v223_v0 = vmov 0.0   ;;  %vm224_vm1 = vmmov 0   ;;  %vm49_vm2 = vcmask 130048   ;;  %s276_s1 = inlined_call_operand.vmem [shape: bf16[16,32], index: 1, kind: input, shape index: {}]   ;;  %s277_s2 = inlined_call_operand.vmem [shape: bf16[16,32], index: 2, kind: input, shape index: {}]   ;;  %s278_s0 = inlined_call_operand.vmem [shape: bf16[16,16], index: 0, kind: input, shape index: {}]   ;;  %s279_s3 = inlined_call_operand.vmem [shape: bf16[32,64], index: 3, kind: input, shape index: {}]   ;;  %s280_s4 = inlined_call_operand.vmem [shape: bf16[16,64], index: 4, kind: output, shape index: {}]  }
   0x1   :  { %204 = vmatprep.subr.bf16.mxu0 %v223_v0  ;;  %v192_v1 = vld [vmem:[%s276_s1] sm:$0xff]   ;;  %206 = vmatprep.mubr.msk.bf16.mxu0 %vm224_vm1, %v223_v0  ;;  %23 = vst.msk [vmem:[#allocation2] sm:$0xff] %vm22_vm0, %v223_v0  ;;  %24 = vst.msk [vmem:[#allocation2 + $0x8] sm:$0xff] %vm22_vm0, %v223_v0  ;;  %v222_v16 = vld [vmem:[%s279_s3 + $0x8] sm:$0xff]   ;;  %vm175_vm3 = vcmask 519168  }
   0x2   :  { %v196_v2 = vld [vmem:[%s277_s2] sm:$0xff]   ;;  %v193_v3 = vunpack.c.l.bf16 %v192_v1  ;;  %v194_v4 = vunpack.c.h.bf16 %v192_v1  ;;  %210 = vmatprep.subr.bf16.mxu1 %v223_v0  ;;  %214 = vmatprep.mubr.msk.bf16.mxu1 %vm224_vm1, %v223_v0 }
   0x3   :  { %v197_v5 = vunpack.c.l.bf16 %v196_v2  ;;  %v198_v6 = vunpack.c.h.bf16 %v196_v2  ;;  %v220_v14 = vld [vmem:[%s278_s0] sm:$0xff]  }
   0x4   :  { %v29_v7 = vmul.f32 0.3, %v193_v3  ;;  %v30_v8 = vmul.f32 0.3, %v194_v4  ;;  %v221_v15 = vld [vmem:[%s279_s3] sm:$0xff]  }
   0x5   :  { %v35_v9 = vmul.f32 0.7, %v197_v5  ;;  %v36_v10 = vmul.f32 0.7, %v198_v6  ;;  %211 = vmatpush3.bf16.msra.mxu1 %v221_v15 }
   0x6   :  { %212 = vmatprep.subr.bf16.mxu1 %v223_v0 }
   0x7   :  { %v37_v11 = vadd.f32 %v35_v9, %v29_v7  ;;  %v38_v12 = vadd.f32 %v36_v10, %v30_v8 }
   0x8   :  { %v40_v17 = vld [vmem:[#allocation2] sm:$0xff]  ;;  %v41_v19 = vld [vmem:[#allocation2 + $0x8] sm:$0xff] }
   0x9   :  { %v39_v13 = vpack.c.bf16 %v38_v12, %v37_v11  ;;  %213 = vmatpush3.bf16.msra.mxu1 %v222_v16 }
   0xb   :  { %205 = vmatpush3.bf16.msra.mxu0 %v39_v13 }
   0xe   :  { %207 = vmatmul.mubr.msk.bf16.vlgmr.msra.gmra.mrb[0].mxu0 %vm49_vm2, %v220_v14 }
  0xe1   :  { %v87_v18 = vpop.f32.mrb[0].mxu0 }
  0xe2   :  { %v94_v20 = vadd.f32 %v87_v18, %v40_v17  ;;  %v208_v21 = vpop.f32.mrb[1].mxu0 }
  0xe3   :  { %v90_v22 = vpop.f32.mrb[2].mxu0 }
  0xe4   :  { %97 = vst.msk [vmem:[#allocation2] sm:$0xff] %vm22_vm0, %v94_v20  ;;  %v95_v23 = vadd.f32 %v90_v22, %v41_v19  ;;  %v209_v24 = vpop.f32.mrb[3].mxu0 }
  0xe6   :  { %98 = vst.msk [vmem:[#allocation2 + $0x8] sm:$0xff] %vm22_vm0, %v95_v23 }
  0xeb   :  { %v102_v25 = vld [vmem:[#allocation2] sm:$0xff] }
  0xed   :  { %v103_v26 = vld [vmem:[#allocation2 + $0x8] sm:$0xff] }
  0xee   :  { %v104_v27 = vpack.c.bf16 %v103_v26, %v102_v25 }
  0xf0   :  { %215 = vmatmul.mubr.msk.bf16.vlgmr.msra.gmra.mrb[0].mxu1 %vm22_vm0, %v104_v27 }
 0x1c3   :  { %v158_v28 = vpop.f32.mrb[0].mxu1 }
 0x1c4   :  { %v165_v29 = vmax.f32 %v158_v28, 0.0  ;;  %v216_v30 = vpop.f32.mrb[1].mxu1 }
 0x1c5   :  { %v161_v31 = vpop.f32.mrb[2].mxu1 }
 0x1c6   :  { %v189_v32 = vpack.c.bf16 %v165_v29, %v165_v29  ;;  %v166_v33 = vmax.f32 %v161_v31, 0.0  ;;  %v217_v34 = vpop.f32.mrb[3].mxu1 }
 0x1c8   :  { %176 = vst.msk [vmem:[%s280_s4] sm:$0xf] %vm175_vm3, %v189_v32  ;;  %v190_v35 = vpack.c.bf16 %v166_v33, %v166_v33 }
 0x1ca   :  { %177 = vst.msk [vmem:[%s280_s4 + $0x4] sm:$0xf] %vm175_vm3, %v190_v35 }

// kernel: vade_forward.7
= control target key start
LH: loop header
LB: loop body
LE: loop exit
PB: predicated region body
PF: predicated region fallthrough
CT: control target
= control target key end

     0   :  { %vm19_vm0 = vcmask 261120   ;;  %v206_v0 = vmov 0.0   ;;  %vm207_vm1 = vmmov 0   ;;  %vm100_vm2 = vcmask 130048   ;;  %s251_s2 = inlined_call_operand.vmem [shape: bf16[32,32], index: 2, kind: input, shape index: {}]   ;;  %s252_s1 = inlined_call_operand.vmem [shape: bf16[16,32], index: 1, kind: input, shape index: {}]   ;;  %s253_s0 = inlined_call_operand.vmem [shape: bf16[16,16], index: 0, kind: input, shape index: {}]   ;;  %s254_s3 = inlined_call_operand.vmem [shape: bf16[16,32], index: 3, kind: output, shape index: {}]  }
   0x1   :  { %186 = vmatprep.subr.bf16.mxu0 %v206_v0  ;;  %v202_v1 = vld [vmem:[%s251_s2] sm:$0xff]   ;;  %190 = vmatprep.mubr.msk.bf16.mxu0 %vm207_vm1, %v206_v0  ;;  %20 = vst.msk [vmem:[#allocation2] sm:$0xff] %vm19_vm0, %v206_v0  ;;  %21 = vst.msk [vmem:[#allocation2 + $0x8] sm:$0xff] %vm19_vm0, %v206_v0  ;;  %v203_v2 = vld [vmem:[%s251_s2 + $0x8] sm:$0xff]   ;;  %vm164_vm3 = vcmask 257024  }
   0x2   :  { %194 = vmatprep.subr.bf16.mxu1 %v206_v0  ;;  %196 = vmatprep.mubr.msk.bf16.mxu1 %vm207_vm1, %v206_v0  ;;  %v204_v3 = vld [vmem:[%s252_s1] sm:$0xff]  }
   0x3   :  { %187 = vmatpush3.bf16.msra.mxu0 %v202_v1  ;;  %v205_v9 = vld [vmem:[%s253_s0] sm:$0xff]  }
   0x4   :  { %188 = vmatprep.subr.bf16.mxu0 %v206_v0 }
   0x7   :  { %189 = vmatpush3.bf16.msra.mxu0 %v203_v2 }
   0x8   :  { %v91_v10 = vld [vmem:[#allocation2] sm:$0xff]  ;;  %v92_v12 = vld [vmem:[#allocation2 + $0x8] sm:$0xff] }
   0xa   :  { %191 = vmatmul.mubr.msk.bf16.vlgmr.msra.gmra.mrb[0].mxu0 %vm19_vm0, %v204_v3 }
  0xdd   :  { %v83_v4 = vpop.f32.mrb[0].mxu0 }
  0xde   :  { %v192_v5 = vpop.f32.mrb[1].mxu0 }
  0xdf   :  { %v86_v6 = vpop.f32.mrb[2].mxu0 }
  0xe0   :  { %v90_v7 = vpack.c.bf16 %v86_v6, %v83_v4  ;;  %v193_v8 = vpop.f32.mrb[3].mxu0 }
  0xe2   :  { %195 = vmatpush3.bf16.msra.mxu1 %v90_v7 }
  0xe5   :  { %197 = vmatmul.mubr.msk.bf16.vlgmr.msra.gmra.mrb[0].mxu1 %vm100_vm2, %v205_v9 }
 0x1b8   :  { %v138_v11 = vpop.f32.mrb[0].mxu1 }
 0x1b9   :  { %v145_v13 = vadd.f32 %v138_v11, %v91_v10  ;;  %v198_v14 = vpop.f32.mrb[1].mxu1 }
 0x1ba   :  { %v141_v15 = vpop.f32.mrb[2].mxu1 }
 0x1bb   :  { %147 = vst.msk [vmem:[#allocation2] sm:$0xff] %vm19_vm0, %v145_v13  ;;  %v146_v16 = vadd.f32 %v141_v15, %v92_v12  ;;  %v199_v17 = vpop.f32.mrb[3].mxu1 }
 0x1bd   :  { %148 = vst.msk [vmem:[#allocation2 + $0x8] sm:$0xff] %vm19_vm0, %v146_v16 }
 0x1c2   :  { %v152_v18 = vld [vmem:[#allocation2] sm:$0xff] }
 0x1c3   :  { %v154_v19 = vmax.f32 %v152_v18, 0.0 }
 0x1c4   :  { %v153_v20 = vld [vmem:[#allocation2 + $0x8] sm:$0xff] }
 0x1c5   :  { %v179_v21 = vpack.c.bf16 %v154_v19, %v154_v19  ;;  %v155_v22 = vmax.f32 %v153_v20, 0.0 }
 0x1c7   :  { %165 = vst.msk [vmem:[%s254_s3] sm:$0xf] %vm164_vm3, %v179_v21  ;;  %v180_v23 = vpack.c.bf16 %v155_v22, %v155_v22 }
 0x1c9   :  { %166 = vst.msk [vmem:[%s254_s3 + $0x4] sm:$0xf] %vm164_vm3, %v180_v23 }

// kernel: vade_forward.8
= control target key start
LH: loop header
LB: loop body
LE: loop exit
PB: predicated region body
PF: predicated region fallthrough
CT: control target
= control target key end

     0   :  { %vm22_vm0 = vcmask 261120   ;;  %v223_v0 = vmov 0.0   ;;  %vm224_vm1 = vmmov 0   ;;  %vm111_vm2 = vcmask 130048   ;;  %s276_s3 = inlined_call_operand.vmem [shape: bf16[32,32], index: 3, kind: input, shape index: {}]   ;;  %s277_s1 = inlined_call_operand.vmem [shape: bf16[16,32], index: 1, kind: input, shape index: {}]   ;;  %s278_s2 = inlined_call_operand.vmem [shape: bf16[16,32], index: 2, kind: input, shape index: {}]   ;;  %s279_s0 = inlined_call_operand.vmem [shape: bf16[16,16], index: 0, kind: input, shape index: {}]   ;;  %s280_s4 = inlined_call_operand.vmem [shape: bf16[16,32], index: 4, kind: output, shape index: {}]  }
   0x1   :  { %204 = vmatprep.subr.bf16.mxu0 %v223_v0  ;;  %v220_v1 = vld [vmem:[%s276_s3] sm:$0xff]   ;;  %208 = vmatprep.mubr.msk.bf16.mxu0 %vm224_vm1, %v223_v0  ;;  %23 = vst.msk [vmem:[#allocation2] sm:$0xff] %vm22_vm0, %v223_v0  ;;  %24 = vst.msk [vmem:[#allocation2 + $0x8] sm:$0xff] %vm22_vm0, %v223_v0  ;;  %v221_v2 = vld [vmem:[%s276_s3 + $0x8] sm:$0xff]   ;;  %vm175_vm3 = vcmask 257024  }
   0x2   :  { %212 = vmatprep.subr.bf16.mxu1 %v223_v0  ;;  %214 = vmatprep.mubr.msk.bf16.mxu1 %vm224_vm1, %v223_v0  ;;  %v192_v3 = vld [vmem:[%s277_s1] sm:$0xff]  }
   0x3   :  { %205 = vmatpush3.bf16.msra.mxu0 %v220_v1  ;;  %v196_v4 = vld [vmem:[%s278_s2] sm:$0xff]   ;;  %v193_v5 = vunpack.c.l.bf16 %v192_v3  ;;  %v194_v6 = vunpack.c.h.bf16 %v192_v3 }
   0x4   :  { %206 = vmatprep.subr.bf16.mxu0 %v223_v0  ;;  %v197_v7 = vunpack.c.l.bf16 %v196_v4  ;;  %v198_v8 = vunpack.c.h.bf16 %v196_v4  ;;  %v222_v21 = vld [vmem:[%s279_s0] sm:$0xff]  }
   0x5   :  { %v29_v9 = vmul.f32 0.3, %v193_v5  ;;  %v30_v10 = vmul.f32 0.3, %v194_v6 }
   0x6   :  { %v35_v11 = vmul.f32 0.7, %v197_v7  ;;  %v36_v12 = vmul.f32 0.7, %v198_v8 }
   0x7   :  { %207 = vmatpush3.bf16.msra.mxu0 %v221_v2 }
   0x8   :  { %v37_v13 = vadd.f32 %v35_v11, %v29_v9  ;;  %v38_v14 = vadd.f32 %v36_v12, %v30_v10  ;;  %v102_v22 = vld [vmem:[#allocation2] sm:$0xff]  ;;  %v103_v24 = vld [vmem:[#allocation2 + $0x8] sm:$0xff] }
   0xa   :  { %v39_v15 = vpack.c.bf16 %v38_v14, %v37_v13 }
   0xc   :  { %209 = vmatmul.mubr.msk.bf16.vlgmr.msra.gmra.mrb[0].mxu0 %vm22_vm0, %v39_v15 }
  0xdf   :  { %v94_v16 = vpop.f32.mrb[0].mxu0 }
  0xe0   :  { %v210_v17 = vpop.f32.mrb[1].mxu0 }
  0xe1   :  { %v97_v18 = vpop.f32.mrb[2].mxu0 }
  0xe2   :  { %v101_v19 = vpack.c.bf16 %v97_v18, %v94_v16  ;;  %v211_v20 = vpop.f32.mrb[3].mxu0 }
  0xe4   :  { %213 = vmatpush3.bf16.msra.mxu1 %v101_v19 }
  0xe7   :  { %215 = vmatmul.mubr.msk.bf16.vlgmr.msra.gmra.mrb[0].mxu1 %vm111_vm2, %v222_v21 }
 0x1ba   :  { %v149_v23 = vpop.f32.mrb[0].mxu1 }
 0x1bb   :  { %v156_v25 = vadd.f32 %v149_v23, %v102_v22  ;;  %v216_v26 = vpop.f32.mrb[1].mxu1 }
 0x1bc   :  { %v152_v27 = vpop.f32.mrb[2].mxu1 }
 0x1bd   :  { %158 = vst.msk [vmem:[#allocation2] sm:$0xff] %vm22_vm0, %v156_v25  ;;  %v157_v28 = vadd.f32 %v152_v27, %v103_v24  ;;  %v217_v29 = vpop.f32.mrb[3].mxu1 }
 0x1bf   :  { %159 = vst.msk [vmem:[#allocation2 + $0x8] sm:$0xff] %vm22_vm0, %v157_v28 }
 0x1c4   :  { %v163_v30 = vld [vmem:[#allocation2] sm:$0xff] }
 0x1c5   :  { %v165_v31 = vmax.f32 %v163_v30, 0.0 }
 0x1c6   :  { %v164_v32 = vld [vmem:[#allocation2 + $0x8] sm:$0xff] }
 0x1c7   :  { %v189_v33 = vpack.c.bf16 %v165_v31, %v165_v31  ;;  %v166_v34 = vmax.f32 %v164_v32, 0.0 }
 0x1c9   :  { %176 = vst.msk [vmem:[%s280_s4] sm:$0xf] %vm175_vm3, %v189_v33  ;;  %v190_v35 = vpack.c.bf16 %v166_v34, %v166_v34 }
 0x1cb   :  { %177 = vst.msk [vmem:[%s280_s4 + $0x4] sm:$0xf] %vm175_vm3, %v190_v35 }

// kernel: vade_forward.6
= control target key start
LH: loop header
LB: loop body
LE: loop exit
PB: predicated region body
PF: predicated region fallthrough
CT: control target
= control target key end

     0   :  { %v1101_v0 = vmov 0.0   ;;  %vm1102_vm0 = vmmov 0   ;;  %vm97_vm1 = vcmask 261120   ;;  %vm818_vm2 = vcmask 257024   ;;  %s1425_s2 = inlined_call_operand.vmem [shape: bf16[32,32], index: 2, kind: input, shape index: {}]   ;;  %s1426_s0 = inlined_call_operand.vmem [shape: bf16[16,32], index: 0, kind: input, shape index: {}]   ;;  %s1427_s4 = inlined_call_operand.vmem [shape: bf16[32,32], index: 4, kind: input, shape index: {}]   ;;  %s1428_s3 = inlined_call_operand.vmem [shape: f32[1,32], index: 3, kind: input, shape index: {}]   ;;  %s1429_s19 = inlined_call_operand.vmem [shape: bf16[16,32], index: 19, kind: output, shape index: {0}]   ;;  %s1430_s6 = inlined_call_operand.vmem [shape: bf16[32,64], index: 6, kind: input, shape index: {}]   ;;  %s1431_s8 = inlined_call_operand.vmem [shape: bf16[64,32], index: 8, kind: input, shape index: {}]   ;;  %s1432_s5 = inlined_call_operand.vmem [shape: f32[1,32], index: 5, kind: input, shape index: {}]   ;;  %s1433_s20 = inlined_call_operand.vmem [shape: bf16[16,32], index: 20, kind: output, shape index: {1}]   ;;  %s1434_s7 = inlined_call_operand.vmem [shape: f32[1,64], index: 7, kind: input, shape index: {}]   ;;  %s1435_s21 = inlined_call_operand.vmem [shape: bf16[16,64], index: 21, kind: output, shape index: {2}]   ;;  %s1436_s9 = inlined_call_operand.vmem [shape: f32[1,32], index: 9, kind: input, shape index: {}]   ;;  %s1437_s10 = inlined_call_operand.vmem [shape: bf16[16,64], index: 10, kind: input, shape index: {}]   ;;  %s1438_s1 = inlined_call_operand.vmem [shape: f32[16,16], index: 1, kind: input, shape index: {}]   ;;  %s1439_s12 = inlined_call_operand.vmem [shape: bf16[64,32], index: 12, kind: input, shape index: {}]   ;;  %s1440_s18 = inlined_call_operand.vmem [shape: f32[16,8], index: 18, kind: input, shape index: {}]   ;;  %s1441_s11 = inlined_call_operand.vmem [shape: f32[1,64], index: 11, kind: input, shape index: {}]   ;;  %s1442_s14 = inlined_call_operand.vmem [shape: bf16[32,32], index: 14, kind: input, shape index: {}]   ;;  %s1443_s13 = inlined_call_operand.vmem [shape: f32[1,32], index: 13, kind: input, shape index: {}]   ;;  %s1444_s16 = inlined_call_operand.vmem [shape: bf16[32,32], index: 16, kind: input, shape index: {}]   ;;  %s1445_s15 = inlined_call_operand.vmem [shape: f32[1,32], index: 15, kind: input, shape index: {}]   ;;  %s1446_s17 = inlined_call_operand.vmem [shape: f32[1,32], index: 17, kind: input, shape index: {}]   ;;  %s1447_s22 = inlined_call_operand.vmem [shape: f32[16,128], index: 22, kind: output, shape index: {3}]  }
   0x1   :  { %1453 = sst [smem:[#allocation2_spill]] %s1425_s2  ;;  %974 = vmatprep.subr.bf16.mxu0 %v1101_v0  ;;  %978 = vmatprep.mubr.msk.bf16.mxu0 %vm1102_vm0, %v1101_v0  ;;  %v898_v22 = vld [vmem:[%s1432_s5] ss:$0 sm:$0xff]  ;;  %vm837_vm3 = vcmask 519168   ;;  %vm324_vm4 = vcmask 523264   ;;  %vm405_vm5 = vcmask 130048  }
   0x2   :  { %1454 = sst [smem:[#allocation3_spill]] %s1426_s0  ;;  %s1460_s29 = sld [smem:[#allocation2_spill]]  ;;  %982 = vmatprep.subr.bf16.mxu1 %v1101_v0  ;;  %986 = vmatprep.mubr.msk.bf16.mxu1 %vm1102_vm0, %v1101_v0  ;;  %v902_v36 = vld [vmem:[%s1434_s7] ss:$0 sm:$0xff]  ;;  %vm779_vm6 = vcmask 64512   ;;  %vm864_vm7 = vcmask 392192  }
   0x3   :  { %1455 = sst [smem:[#allocation4_spill]] %s1427_s4  ;;  %s1461_s0 = sld [smem:[#allocation3_spill]]  ;;  %v906_v48 = vld [vmem:[%s1436_s9] ss:$0 sm:$0xff]  ;;  %vm869_vm8 = vcmask 654336   ;;  %vm872_vm9 = vcmask 719872  }
   0x4   :  { %1456 = sst [smem:[#allocation5_spill]] %s1428_s3  ;;  %v1072_v59 = vld [vmem:[%s1437_s10] sm:$0xff]   ;;  %s1103_s9 = smov 112  }
   0x5   :  { %1457 = sst [smem:[#allocation6_spill]] %s1429_s19  ;;  %s1463_s3 = sld [smem:[#allocation5_spill]]  ;;  %v369_v62 = vld [vmem:[%s1438_s1] sm:$0xff] }
   0x6   :  { %1458 = sst [smem:[#allocation7_spill]] %s1430_s6  ;;  %s1464_s30 = sld [smem:[#allocation6_spill]] }
   0x7   :  { %1459 = sst [smem:[#allocation8_spill]] %s1431_s8  ;;  %s1462_s8 = sld [smem:[#allocation4_spill]] }
   0x8   :  { %v1061_v1 = vld [vmem:[%s1460_s29] sm:$0xff]   ;;  %v1062_v2 = vld [vmem:[%s1460_s29 + $0x8] sm:$0xff]   ;;  %s1465_s6 = sld [smem:[#allocation7_spill]]  ;;  %s1466_s4 = sld [smem:[#allocation8_spill]] }
   0x9   :  { %975 = vmatpush3.bf16.msra.mxu0 %v1061_v1  ;;  %v1063_v3 = vld [vmem:[%s1461_s0] sm:$0xff]   ;;  %s1106_s2 = smov 80  }
   0xa   :  { %976 = vmatprep.subr.bf16.mxu0 %v1101_v0 }
   0xb   :  { %v893_v6 = vld [vmem:[%s1463_s3] ss:$0 sm:$0xff] }
   0xd   :  { %977 = vmatpush3.bf16.msra.mxu0 %v1062_v2  ;;  %v1064_v4 = vld [vmem:[%s1462_s8] sm:$0xff]   ;;  %v1065_v5 = vld [vmem:[%s1462_s8 + $0x8] sm:$0xff]  }
   0xe   :  { %990 = vmatprep.subr.bf16.mxu0 %v1101_v0  ;;  %983 = vmatpush3.bf16.msra.mxu1 %v1064_v4  ;;  %v1066_v18 = vld [vmem:[%s1465_s6] sm:$0xff]   ;;  %v1067_v19 = vld [vmem:[%s1465_s6 + $0x8] sm:$0xff]   ;;  %v1070_v34 = vld [vmem:[%s1466_s4 + $0x10] sm:$0xff]  }
   0xf   :  { %984 = vmatprep.subr.bf16.mxu1 %v1101_v0  ;;  %v1068_v20 = vld [vmem:[%s1466_s4] sm:$0xff]   ;;  %v1069_v21 = vld [vmem:[%s1466_s4 + $0x8] sm:$0xff]   ;;  %v1071_v35 = vld [vmem:[%s1466_s4 + $0x18] sm:$0xff]  }
  0x10   :  { %979 = vmatmul.mubr.msk.bf16.vlgmr.msra.gmra.mrb[0].mxu0 %vm97_vm1, %v1063_v3  ;;  %v370_v2 = vld [vmem:[%s1438_s1 + $0x8] sm:$0xff] }
  0x11   :  { %994 = vmatprep.mubr.msk.bf16.mxu0 %vm1102_vm0, %v1101_v0  ;;  %991 = vmatpush3.bf16.msra.mxu0 %v1066_v18 }
  0x12   :  { %985 = vmatpush3.bf16.msra.mxu1 %v1065_v5  ;;  %992 = vmatprep.subr.bf16.mxu0 %v1101_v0 }
  0x13   :  { %998 = vmatprep.subr.bf16.mxu1 %v1101_v0 }
  0x15   :  { %993 = vmatpush3.bf16.msra.mxu0 %v1067_v19  ;;  %v912_v19 = vld [vmem:[%s1441_s11] ss:$0 sm:$0xff] }
  0x16   :  { %1010 = vmatprep.subr.bf16.mxu0 %v1101_v0 }
  0xe3   :  { %v135_v7 = vpop.f32.mrb[0].mxu0 }
  0xe4   :  { %v136_v8 = vadd.f32 %v893_v6, %v135_v7  ;;  %v980_v9 = vpop.f32.mrb[1].mxu0 }
  0xe5   :  { %v138_v10 = vpop.f32.mrb[2].mxu0 }
  0xe6   :  { %v142_v11 = vmax.f32 %v136_v8, 0.0  ;;  %v139_v12 = vadd.f32 %v893_v6, %v138_v10  ;;  %v981_v13 = vpop.f32.mrb[3].mxu0 }
  0xe7   :  { %v1074_v13 = vld [vmem:[%s1439_s12 + $0x8] sm:$0xff]  }
  0xe8   :  { %v937_v14 = vpack.c.bf16 %v142_v11, %v142_v11  ;;  %v143_v15 = vmax.f32 %v139_v12, 0.0  ;;  %v1073_v12 = vld [vmem:[%s1439_s12] sm:$0xff]  }
  0xea   :  { %819 = vst.msk [vmem:[%s1464_s30] sm:$0xf] %vm818_vm2, %v937_v14  ;;  %v144_v16 = vpack.c.bf16 %v143_v15, %v142_v11  ;;  %v938_v17 = vpack.c.bf16 %v143_v15, %v143_v15  ;;  %v1075_v14 = vld [vmem:[%s1439_s12 + $0x10] sm:$0xff]   ;;  %v1076_v15 = vld [vmem:[%s1439_s12 + $0x18] sm:$0xff]  }
  0xec   :  { %820 = vst.msk [vmem:[%s1464_s30 + $0x4] sm:$0xf] %vm818_vm2, %v938_v17  ;;  %987 = vmatmul.mubr.msk.bf16.vlgmr.msra.gmra.mrb[0].mxu1 %vm97_vm1, %v144_v16  ;;  %v686_v16 = vld [vmem:[%s1440_s18] sm:$0xff]  ;;  %v687_v17 = vld [vmem:[%s1440_s18 + $0x8] sm:$0xff] }
  0xed   :  { %1006 = vmatprep.mubr.msk.bf16.mxu1 %vm1102_vm0, %v1101_v0  ;;  %999 = vmatpush3.bf16.msra.mxu1 %v1068_v20  ;;  %v1051_v18 = vpack.c.bf16 %v687_v17, %v686_v16 }
  0xee   :  { %1000 = vmatprep.subr.bf16.mxu1 %v1101_v0 }
  0xf1   :  { %1001 = vmatpush3.bf16.msra.mxu1 %v1069_v21 }
  0xf2   :  { %1002 = vmatprep.subr.bf16.mxu1 %v1101_v0 }
  0xf5   :  { %1003 = vmatpush3.bf16.msra.mxu1 %v1070_v34 }
  0xf6   :  { %1004 = vmatprep.subr.bf16.mxu1 %v1101_v0 }
  0xf9   :  { %1005 = vmatpush3.bf16.msra.mxu1 %v1071_v35 }
  0xfa   :  { %1028 = vmatprep.subr.bf16.mxu1 %v1101_v0 }
 0x1bf   :  { %v205_v23 = vpop.f32.mrb[0].mxu1 }
 0x1c0   :  { %v206_v24 = vadd.f32 %v898_v22, %v205_v23  ;;  %v988_v25 = vpop.f32.mrb[1].mxu1 }
 0x1c1   :  { %v208_v26 = vpop.f32.mrb[2].mxu1 }
 0x1c2   :  { %v212_v27 = vmax.f32 %v206_v24, 0.0  ;;  %v209_v28 = vadd.f32 %v898_v22, %v208_v26  ;;  %v989_v29 = vpop.f32.mrb[3].mxu1 }
 0x1c3   :  { %v1077_v29 = vld [vmem:[%s1442_s14] sm:$0xff]  }
 0x1c4   :  { %v939_v30 = vpack.c.bf16 %v212_v27, %v212_v27  ;;  %v213_v31 = vmax.f32 %v209_v28, 0.0 }
 0x1c6   :  { %828 = vst.msk [vmem:[%s1433_s20] sm:$0xf] %vm818_vm2, %v939_v30  ;;  %v214_v32 = vpack.c.bf16 %v213_v31, %v212_v27  ;;  %v940_v33 = vpack.c.bf16 %v213_v31, %v213_v31  ;;  %v1078_v30 = vld [vmem:[%s1442_s14 + $0x8] sm:$0xff]   ;;  %v777_v31 = vmul.f32 %v686_v16, %v686_v16  ;;  %s1105_s14 = smov 64  }
 0x1c8   :  { %829 = vst.msk [vmem:[%s1433_s20 + $0x4] sm:$0xf] %vm818_vm2, %v940_v33  ;;  %995 = vmatmul.mubr.msk.bf16.vlgmr.msra.gmra.mrb[4].mxu0 %vm97_vm1, %v214_v32  ;;  %v778_v32 = vmul.f32 %v687_v17, %v687_v17  ;;  %v780_v33 = vsel %vm779_vm6, %v777_v31, 0.0 }
 0x1c9   :  { %1012 = vmatprep.mubr.msk.bf16.mxu0 %vm1102_vm0, %v1101_v0  ;;  %1011 = vmatpush3.bf16.msra.mxu0 %v1072_v59 }
 0x1ca   :  { %1016 = vmatprep.subr.bf16.mxu0 %v1101_v0  ;;  %v781_v34 = vsel %vm779_vm6, %v778_v32, 0.0 }
 0x1cb   :  { %v782_v35 = vadd.f32 %v781_v34, %v780_v33 }
 0x29b   :  { %v275_v37 = vpop.f32.mrb[4].mxu0 }
 0x29c   :  { %v276_v38 = vadd.f32 %v902_v36, %v275_v37  ;;  %v996_v39 = vpop.f32.mrb[5].mxu0 }
 0x29d   :  { %v278_v40 = vpop.f32.mrb[6].mxu0 }
 0x29e   :  { %v282_v41 = vmax.f32 %v276_v38, 0.0  ;;  %v279_v42 = vadd.f32 %v902_v36, %v278_v40  ;;  %v997_v43 = vpop.f32.mrb[7].mxu0  ;;  %v783_v36 = vrot.slane %v782_v35, 4  ;;  %v915_v40 = vld [vmem:[%s1443_s13] ss:$0 sm:$0xff]  ;;  %s1104_s13 = smov 32  }
 0x2a0   :  { %v941_v44 = vpack.c.bf16 %v282_v41, %v282_v41  ;;  %v283_v45 = vmax.f32 %v279_v42, 0.0  ;;  %v784_v37 = vadd.f32 %v783_v36, %v782_v35 }
 0x2a2   :  { %838 = vst.msk [vmem:[%s1435_s21] sm:$0xf] %vm837_vm3, %v941_v44  ;;  %v284_v46 = vpack.c.bf16 %v283_v45, %v282_v41  ;;  %v942_v47 = vpack.c.bf16 %v283_v45, %v283_v45  ;;  %v785_v38 = vrot.slane %v784_v37, 2 }
 0x2a4   :  { %839 = vst.msk [vmem:[%s1435_s21 + $0x4] sm:$0xf] %vm837_vm3, %v942_v47  ;;  %1007 = vmatmul.mubr.msk.bf16.vlgmr.msra.gmra.mrb[4].mxu1 %vm324_vm4, %v284_v46  ;;  %v786_v39 = vadd.f32 %v785_v38, %v784_v37 }
 0x2a5   :  { %1032 = vmatprep.mubr.msk.bf16.mxu1 %vm1102_vm0, %v1101_v0  ;;  %1029 = vmatpush3.bf16.msra.mxu1 %v1077_v29 }
 0x2a6   :  { %1030 = vmatprep.subr.bf16.mxu1 %v1101_v0  ;;  %v787_v45 = vrot.slane %v786_v39, 1 }
 0x2a9   :  { %1031 = vmatpush3.bf16.msra.mxu1 %v1078_v30 }
 0x2aa   :  { %1036 = vmatprep.subr.bf16.mxu1 %v1101_v0 }
 0x377   :  { %v362_v49 = vpop.f32.mrb[4].mxu1 }
 0x378   :  { %v1317_v50 = vadd.f32 %v906_v48, %v362_v49  ;;  %v1008_v51 = vpop.f32.mrb[5].mxu1 }
 0x379   :  { %v365_v52 = vpop.f32.mrb[6].mxu1 }
 0x37a   :  { %v371_v53 = vmul.f32 0.5, %v1317_v50  ;;  %v1320_v54 = vadd.f32 %v906_v48, %v365_v52  ;;  %v1009_v55 = vpop.f32.mrb[7].mxu1  ;;  %v788_v52 = vadd.f32 %v787_v45, %v786_v39 }
 0x37c   :  { %v373_v56 = vmul.f32 1.442695, %v371_v53  ;;  %v372_v57 = vmul.f32 0.5, %v1320_v54 }
 0x37e   :  { %1081 = vpow2.f32 %v373_v56  ;;  %v375_v58 = vmul.f32 1.442695, %v372_v57 }
 0x380   :  { %1083 = vpow2.f32 %v375_v58 }
 0x388   :  { %v1082_v60 = vpop.eup %1081 }
 0x389   :  { %379 = vrot.lane.b32.xlu0 %v1082_v60, %s1103_s9 }
 0x38a   :  { %v1084_v61 = vpop.eup %1083 }
 0x38d   :  { %381 = vrot.lane.b32.xlu0 %v1084_v61, %s1103_s9 }
 0x3fb   :  { %v380_v63 = vpop.permute.xlu0 %379 }
 0x3fc   :  { %v385_v1 = vmul.f32 %v380_v63, %v369_v62 }
 0x3fe   :  { %v1334_v3 = vadd.f32 %v385_v1, %v1317_v50 }
 0x3ff   :  { %v382_v4 = vpop.permute.xlu0 %381 }
 0x400   :  { %v386_v5 = vmul.f32 %v382_v4, %v370_v2  ;;  %v769_v6 = vmul.f32 %v1334_v3, %v1334_v3 }
 0x402   :  { %v1339_v7 = vadd.f32 %v386_v5, %v1320_v54  ;;  %v771_v8 = vsel %vm405_vm5, %v769_v6, 0.0 }
 0x403   :  { %772 = vadd.xlane.f32.xlu1 %v771_v8 }
 0x404   :  { %v389_v9 = vpack.c.bf16 %v1339_v7, %v1334_v3  ;;  %v770_v10 = vmul.f32 %v1339_v7, %v1339_v7 }
 0x406   :  { %1013 = vmatmul.mubr.msk.bf16.vlgmr.msra.gmra.mrb[8].mxu0 %vm405_vm5, %v389_v9  ;;  %v774_v11 = vsel %vm405_vm5, %v770_v10, 0.0 }
 0x407   :  { %775 = vadd.xlane.f32.xlu1 %v774_v11  ;;  %1024 = vmatprep.mubr.msk.bf16.mxu0 %vm1102_vm0, %v1101_v0  ;;  %v1079_v11 = vld [vmem:[%s1444_s16] sm:$0xff]  }
 0x408   :  { %1017 = vmatpush3.bf16.msra.mxu0 %v1073_v12  ;;  %v1080_v12 = vld [vmem:[%s1444_s16 + $0x8] sm:$0xff]  }
 0x409   :  { %1018 = vmatprep.subr.bf16.mxu0 %v1101_v0 }
 0x40c   :  { %1019 = vmatpush3.bf16.msra.mxu0 %v1074_v13 }
 0x40d   :  { %1020 = vmatprep.subr.bf16.mxu0 %v1101_v0 }
 0x410   :  { %1021 = vmatpush3.bf16.msra.mxu0 %v1075_v14 }
 0x411   :  { %1022 = vmatprep.subr.bf16.mxu0 %v1101_v0 }
 0x414   :  { %1023 = vmatpush3.bf16.msra.mxu0 %v1076_v15 }
 0x415   :  { %1052 = vmatprep.subr.bf16.mxu0 %v1051_v18 }
 0x490   :  { %v773_v41 = vpop.xlane.xlu1 %772 }
 0x491   :  { %v789_v60 = vadd.f32 %v788_v52, %v773_v41 }
 0x494   :  { %v776_v53 = vpop.xlane.xlu1 %775 }
 0x495   :  { %v790_v57 = vadd.f32 %v788_v52, %v776_v53 }
 0x4d9   :  { %v443_v20 = vpop.f32.mrb[8].mxu0 }
 0x4da   :  { %v444_v21 = vadd.f32 %v912_v19, %v443_v20  ;;  %v1014_v22 = vpop.f32.mrb[9].mxu0 }
 0x4db   :  { %v446_v23 = vpop.f32.mrb[10].mxu0 }
 0x4dc   :  { %v447_v24 = vadd.f32 %v912_v19, %v446_v23  ;;  %v1015_v25 = vpop.f32.mrb[11].mxu0  ;;  %v450_v26 = vmax.f32 %v444_v21, 0.0 }
 0x4de   :  { %v451_v27 = vmax.f32 %v447_v24, 0.0  ;;  %v925_v24 = vld [vmem:[%s1446_s17] ss:$0 sm:$0xff] }
 0x4e0   :  { %v452_v28 = vpack.c.bf16 %v451_v27, %v450_v26 }
 0x4e2   :  { %1025 = vmatmul.mubr.msk.bf16.vlgmr.msra.gmra.mrb[12].mxu0 %vm324_vm4, %v452_v28 }
 0x4e3   :  { %1048 = vmatprep.mubr.msk.f32.mxu0 %vm405_vm5, %v1334_v3  ;;  %1054 = vmatpush3.bf16.msra.mxu0 %v1051_v18 }
 0x4ea   :  { %1049 = vmatmul.mubr.msk.f32.vlgmr.msra.gmra.mrb[16].mxu0 %vm405_vm5, %v1339_v7 }
 0x5b5   :  { %v529_v42 = vpop.f32.mrb[12].mxu0 }
 0x5b6   :  { %v530_v43 = vadd.f32 %v915_v40, %v529_v42  ;;  %v1026_v44 = vpop.f32.mrb[13].mxu0 }
 0x5b7   :  { %v532_v46 = vpop.f32.mrb[14].mxu0 }
 0x5b8   :  { %v533_v47 = vadd.f32 %v915_v40, %v532_v46  ;;  %v1027_v48 = vpop.f32.mrb[15].mxu0  ;;  %v536_v49 = vmax.f32 %v530_v43, 0.0 }
 0x5ba   :  { %v537_v51 = vmax.f32 %v533_v47, 0.0 }
 0x5bc   :  { %v538_v55 = vpack.c.bf16 %v537_v51, %v536_v49 }
 0x5bd   :  { %v1050_v56 = vpop.f32.mrb[16].mxu0 }
 0x5be   :  { %v792_v58 = vmul.f32 2.0, %v1050_v56  ;;  %1033 = vmatmul.mubr.msk.bf16.vlgmr.msra.gmra.mrb[8].mxu1 %vm97_vm1, %v538_v55  ;;  %v760_v59 = vpop.f32.mrb[17].mxu0 }
 0x5bf   :  { %v791_v61 = vmul.f32 2.0, %v760_v59  ;;  %1040 = vmatprep.mubr.msk.bf16.mxu1 %vm1102_vm0, %v1101_v0  ;;  %1037 = vmatpush3.bf16.msra.mxu1 %v1079_v11 }
 0x5c0   :  { %v794_v62 = vsub.f32 %v790_v57, %v792_v58  ;;  %1038 = vmatprep.subr.bf16.mxu1 %v1101_v0  ;;  %v921_v0 = vld [vmem:[%s1445_s15] ss:$0 sm:$0xff] }
 0x5c1   :  { %v793_v63 = vsub.f32 %v789_v60, %v791_v61 }
 0x5c2   :  { %v796_v1 = vmax.f32 %v794_v62, 0.0 }
 0x5c3   :  { %v795_v2 = vmax.f32 %v793_v63, 0.0  ;;  %1039 = vmatpush3.bf16.msra.mxu1 %v1080_v12 }
 0x5c4   :  { %v798_v4 = vadd.f32 1.0, %v796_v1 }
 0x5c5   :  { %v797_v5 = vadd.f32 1.0, %v795_v2 }
 0x5c6   :  { %1085 = vrcp.f32 %v798_v4 }
 0x5c7   :  { %1087 = vrcp.f32 %v797_v5 }
 0x5d0   :  { %v1086_v6 = vpop.eup %1085 }
 0x5d1   :  { %v1088_v8 = vpop.eup %1087  ;;  %v804_v9 = vsel %vm779_vm6, %v1086_v6, 0.0 }
 0x5d2   :  { %805 = vadd.xlane.f32.xlu1 %v804_v9  ;;  %v801_v10 = vsel %vm779_vm6, %v1088_v8, 0.0 }
 0x5d3   :  { %802 = vadd.xlane.f32.xlu0 %v801_v10 }
 0x5e3   :  { %842 = vrot.lane.b32.xlu1 %v1317_v50, %s1104_s13 }
 0x5e7   :  { %844 = vrot.lane.b32.xlu1 %v1320_v54, %s1104_s13 }
 0x5eb   :  { %848 = vrot.lane.b32.xlu1 %v1334_v3, %s1105_s14 }
 0x5ef   :  { %850 = vrot.lane.b32.xlu1 %v1339_v7, %s1105_s14 }
 0x65f   :  { %v806_v50 = vpop.xlane.xlu1 %805 }
 0x660   :  { %1089 = vrcp.f32 %v806_v50  ;;  %v803_v54 = vpop.xlane.xlu0 %802 }
 0x661   :  { %1091 = vrcp.f32 %v803_v54 }
 0x663   :  { %v843_v35 = vpop.permute.xlu1 %842 }
 0x667   :  { %v845_v39 = vpop.permute.xlu1 %844 }
 0x66a   :  { %v1090_v13 = vpop.eup %1089 }
 0x66b   :  { %v1092_v3 = vpop.eup %1091  ;;  %v810_v14 = vmul.f32 %v1090_v13, %v1086_v6  ;;  %v849_v41 = vpop.permute.xlu1 %848 }
 0x66c   :  { %v809_v7 = vmul.f32 %v1092_v3, %v1088_v8 }
 0x66d   :  { %858 = vrot.lane.b32.xlu1 %v810_v14, %s1106_s2 }
 0x66e   :  { %856 = vrot.lane.b32.xlu0 %v809_v7, %s1106_s2 }
 0x66f   :  { %v851_v43 = vpop.permute.xlu1 %850 }
 0x691   :  { %v599_v15 = vpop.f32.mrb[8].mxu1 }
 0x692   :  { %v600_v16 = vadd.f32 %v921_v0, %v599_v15  ;;  %v1034_v17 = vpop.f32.mrb[9].mxu1 }
 0x693   :  { %v602_v18 = vpop.f32.mrb[10].mxu1 }
 0x694   :  { %v603_v19 = vadd.f32 %v921_v0, %v602_v18  ;;  %v1035_v20 = vpop.f32.mrb[11].mxu1  ;;  %v606_v21 = vmax.f32 %v600_v16, 0.0 }
 0x696   :  { %v607_v22 = vmax.f32 %v603_v19, 0.0 }
 0x698   :  { %v608_v23 = vpack.c.bf16 %v607_v22, %v606_v21 }
 0x69a   :  { %1041 = vmatmul.mubr.msk.bf16.vlgmr.msra.gmra.mrb[12].mxu1 %vm97_vm1, %v608_v23 }
 0x6df   :  { %v859_v53 = vpop.permute.xlu1 %858 }
 0x6e0   :  { %v857_v47 = vpop.permute.xlu0 %856 }
 0x76d   :  { %v669_v25 = vpop.f32.mrb[12].mxu1 }
 0x76e   :  { %v670_v26 = vadd.f32 %v925_v24, %v669_v25  ;;  %v1042_v27 = vpop.f32.mrb[13].mxu1 }
 0x76f   :  { %v672_v28 = vpop.f32.mrb[14].mxu1 }
 0x770   :  { %v676_v29 = vsub.f32 0.0, %v670_v26  ;;  %v673_v30 = vadd.f32 %v925_v24, %v672_v28  ;;  %v1043_v31 = vpop.f32.mrb[15].mxu1 }
 0x772   :  { %v678_v32 = vmul.f32 1.442695, %v676_v29  ;;  %v677_v33 = vsub.f32 0.0, %v673_v30 }
 0x774   :  { %1093 = vpow2.f32 %v678_v32  ;;  %v680_v34 = vmul.f32 1.442695, %v677_v33 }
 0x776   :  { %1095 = vpow2.f32 %v680_v34 }
 0x77e   :  { %v1094_v36 = vpop.eup %1093 }
 0x77f   :  { %v682_v37 = vadd.f32 1.0, %v1094_v36 }
 0x780   :  { %v1096_v38 = vpop.eup %1095 }
 0x781   :  { %1097 = vrcp.f32 %v682_v37  ;;  %v683_v40 = vadd.f32 1.0, %v1096_v38 }
 0x783   :  { %1099 = vrcp.f32 %v683_v40 }
 0x78b   :  { %v1098_v42 = vpop.eup %1097 }
 0x78c   :  { %v862_v44 = vsel %vm97_vm1, %v1098_v42, %v843_v35 }
 0x78d   :  { %v1100_v45 = vpop.eup %1099  ;;  %v865_v46 = vsel %vm864_vm7, %v862_v44, %v843_v35 }
 0x78e   :  { %v867_v48 = vsel %vm324_vm4, %v865_v46, %v849_v41  ;;  %v863_v49 = vsel %vm97_vm1, %v1100_v45, %v845_v39 }
 0x78f   :  { %v870_v51 = vsel %vm869_vm8, %v867_v48, %v857_v47  ;;  %v866_v52 = vsel %vm864_vm7, %v863_v49, %v845_v39 }
 0x790   :  { %v873_v55 = vsel %vm872_vm9, %v870_v51, 0.0  ;;  %v868_v56 = vsel %vm324_vm4, %v866_v52, %v851_v43 }
 0x791   :  { %875 = vst [vmem:[%s1447_s22] sm:$0xff] %v873_v55  ;;  %v871_v57 = vsel %vm869_vm8, %v868_v56, %v859_v53 }
 0x792   :  { %v874_v58 = vsel %vm872_vm9, %v871_v57, 0.0 }
 0x793   :  { %876 = vst [vmem:[%s1447_s22 + $0x8] sm:$0xff] %v874_v58 }

// kernel: vade_forward.11
= control target key start
LH: loop header
LB: loop body
LE: loop exit
PB: predicated region body
PF: predicated region fallthrough
CT: control target
= control target key end

     0   :  { %v221_v0 = vmov 0.0   ;;  %vm222_vm0 = vmmov 0   ;;  %vm46_vm1 = vcmask 130048   ;;  %vm22_vm2 = vcmask 64512   ;;  %s279_s3 = inlined_call_operand.vmem [shape: bf16[16,8], index: 3, kind: input, shape index: {}]   ;;  %s280_s1 = inlined_call_operand.vmem [shape: bf16[16,16], index: 1, kind: input, shape index: {}]   ;;  %s281_s2 = inlined_call_operand.vmem [shape: f32[16,16], index: 2, kind: input, shape index: {}]   ;;  %s282_s0 = inlined_call_operand.vmem [shape: bf16[16,16], index: 0, kind: input, shape index: {}]   ;;  %s283_s4 = inlined_call_operand.vmem [shape: f32[16,128], index: 4, kind: output, shape index: {}]  }
   0x1   :  { %197 = vmatprep.subr.bf16.mxu0 %v221_v0  ;;  %v211_v1 = vld [vmem:[%s279_s3] sm:$0xff]   ;;  %199 = vmatprep.mubr.msk.bf16.mxu0 %vm222_vm0, %v221_v0  ;;  %v32_v4 = vld [vmem:[%s281_s2 + $0x8] sm:$0xff]  ;;  %23 = vst.msk [vmem:[#allocation2] sm:$0xff] %vm22_vm2, %v221_v0  ;;  %24 = vst.msk [vmem:[#allocation2 + $0x8] sm:$0xff] %vm22_vm2, %v221_v0 }
   0x2   :  { %v190_v2 = vld [vmem:[%s280_s1] sm:$0xff]   ;;  %203 = vmatprep.subr.bf16.mxu1 %v221_v0  ;;  %205 = vmatprep.mubr.msk.bf16.mxu1 %vm222_vm0, %v221_v0  ;;  %v34_v8 = vmul.f32 0.7, %v32_v4 }
   0x3   :  { %v31_v3 = vld [vmem:[%s281_s2] sm:$0xff]  ;;  %198 = vmatpush3.bf16.msra.mxu0 %v211_v1  ;;  %v191_v5 = vunpack.c.l.bf16 %v190_v2  ;;  %v192_v6 = vunpack.c.h.bf16 %v190_v2 }
   0x4   :  { %v33_v7 = vmul.f32 0.7, %v31_v3  ;;  %v212_v19 = vld [vmem:[%s282_s0] sm:$0xff]  }
   0x5   :  { %v29_v9 = vmul.f32 0.3, %v191_v5  ;;  %v30_v10 = vmul.f32 0.3, %v192_v6 }
   0x7   :  { %v35_v11 = vadd.f32 %v33_v7, %v29_v9  ;;  %v36_v12 = vadd.f32 %v34_v8, %v30_v10 }
   0x8   :  { %v92_v20 = vld [vmem:[#allocation2] sm:$0xff]  ;;  %v93_v22 = vld [vmem:[#allocation2 + $0x8] sm:$0xff] }
   0x9   :  { %v37_v13 = vpack.c.bf16 %v36_v12, %v35_v11 }
   0xb   :  { %200 = vmatmul.mubr.msk.bf16.vlgmr.msra.gmra.mrb[0].mxu0 %vm46_vm1, %v37_v13 }
  0xde   :  { %v84_v14 = vpop.f32.mrb[0].mxu0 }
  0xdf   :  { %v201_v15 = vpop.f32.mrb[1].mxu0 }
  0xe0   :  { %v87_v16 = vpop.f32.mrb[2].mxu0 }
  0xe1   :  { %v91_v17 = vpack.c.bf16 %v87_v16, %v84_v14  ;;  %v202_v18 = vpop.f32.mrb[3].mxu0 }
  0xe3   :  { %204 = vmatpush3.bf16.msra.mxu1 %v91_v17 }
  0xe6   :  { %206 = vmatmul.mubr.msk.bf16.vlgmr.msra.gmra.mrb[0].mxu1 %vm46_vm1, %v212_v19 }
 0x1b9   :  { %v138_v21 = vpop.f32.mrb[0].mxu1 }
 0x1ba   :  { %v145_v23 = vadd.f32 %v138_v21, %v92_v20  ;;  %v207_v24 = vpop.f32.mrb[1].mxu1 }
 0x1bb   :  { %v141_v25 = vpop.f32.mrb[2].mxu1 }
 0x1bc   :  { %148 = vst.msk [vmem:[#allocation2] sm:$0xff] %vm22_vm2, %v145_v23  ;;  %v146_v26 = vadd.f32 %v141_v25, %v93_v22  ;;  %v208_v27 = vpop.f32.mrb[3].mxu1 }
 0x1be   :  { %149 = vst.msk [vmem:[#allocation2 + $0x8] sm:$0xff] %vm22_vm2, %v146_v26 }
 0x1c3   :  { %v153_v28 = vld [vmem:[#allocation2] sm:$0xff] }
 0x1c4   :  { %v155_v29 = vsel %vm22_vm2, %v153_v28, -inf }
 0x1c5   :  { %156 = vmax.xlane.f32.xlu0 %v155_v29  ;;  %v154_v30 = vld [vmem:[#allocation2 + $0x8] sm:$0xff] }
 0x1c6   :  { %v158_v31 = vsel %vm22_vm2, %v154_v30, -inf }
 0x1c9   :  { %159 = vmax.xlane.f32.xlu0 %v158_v31 }
 0x252   :  { %v157_v32 = vpop.xlane.xlu0 %156 }
 0x253   :  { %v161_v33 = vsub.f32 %v153_v28, %v157_v32 }
 0x255   :  { %v163_v34 = vmul.f32 1.442695, %v161_v33 }
 0x256   :  { %v160_v35 = vpop.xlane.xlu0 %159 }
 0x257   :  { %213 = vpow2.f32 %v163_v34  ;;  %v162_v36 = vsub.f32 %v154_v30, %v160_v35 }
 0x259   :  { %v165_v37 = vmul.f32 1.442695, %v162_v36 }
 0x25b   :  { %215 = vpow2.f32 %v165_v37 }
 0x261   :  { %v214_v38 = vpop.eup %213 }
 0x262   :  { %v167_v39 = vsel %vm22_vm2, %v214_v38, 0.0 }
 0x263   :  { %168 = vadd.xlane.f32.xlu1 %v167_v39 }
 0x265   :  { %v216_v40 = vpop.eup %215 }
 0x266   :  { %v170_v41 = vsel %vm22_vm2, %v216_v40, 0.0 }
 0x267   :  { %171 = vadd.xlane.f32.xlu1 %v170_v41 }
 0x2f0   :  { %v169_v42 = vpop.xlane.xlu1 %168 }
 0x2f1   :  { %217 = vrcp.f32 %v169_v42 }
 0x2f4   :  { %v172_v43 = vpop.xlane.xlu1 %171 }
 0x2f5   :  { %219 = vrcp.f32 %v172_v43 }
 0x2fb   :  { %v218_v44 = vpop.eup %217 }
 0x2fc   :  { %v175_v45 = vmul.f32 %v218_v44, %v214_v38 }
 0x2fe   :  { %v177_v46 = vsel %vm22_vm2, %v175_v45, 0.0 }
 0x2ff   :  { %v220_v47 = vpop.eup %219  ;;  %179 = vst [vmem:[%s283_s4] sm:$0xff] %v177_v46 }
 0x300   :  { %v176_v48 = vmul.f32 %v220_v47, %v216_v40 }
 0x302   :  { %v178_v49 = vsel %vm22_vm2, %v176_v48, 0.0 }
 0x303   :  { %180 = vst [vmem:[%s283_s4 + $0x8] sm:$0xff] %v178_v49 }

// kernel: vade_forward.10
= control target key start
LH: loop header
LB: loop body
LE: loop exit
PB: predicated region body
PF: predicated region fallthrough
CT: control target
= control target key end

     0   :  { %v249_v0 = vmov 0.0   ;;  %vm250_vm0 = vmmov 0   ;;  %vm72_vm1 = vcmask 523264   ;;  %vm22_vm2 = vcmask 130048   ;;  %s308_s3 = inlined_call_operand.vmem [shape: bf16[64,16], index: 3, kind: input, shape index: {}]   ;;  %s309_s1 = inlined_call_operand.vmem [shape: bf16[16,64], index: 1, kind: input, shape index: {}]   ;;  %s310_s2 = inlined_call_operand.vmem [shape: bf16[16,64], index: 2, kind: input, shape index: {}]   ;;  %s311_s0 = inlined_call_operand.vmem [shape: bf16[16,16], index: 0, kind: input, shape index: {}]   ;;  %s312_s4 = inlined_call_operand.vmem [shape: bf16[16,16], index: 4, kind: output, shape index: {}]  }
   0x1   :  { %224 = vmatprep.subr.bf16.mxu0 %v249_v0  ;;  %v244_v1 = vld [vmem:[%s308_s3] sm:$0xff]   ;;  %232 = vmatprep.mubr.msk.bf16.mxu0 %vm250_vm0, %v249_v0  ;;  %v245_v2 = vld [vmem:[%s308_s3 + $0x8] sm:$0xff]   ;;  %v246_v9 = vld [vmem:[%s308_s3 + $0x10] sm:$0xff]   ;;  %23 = vst.msk [vmem:[#allocation2] sm:$0xff] %vm22_vm2, %v249_v0  ;;  %vm191_vm3 = vcmask 125952  }
   0x2   :  { %236 = vmatprep.subr.bf16.mxu1 %v249_v0  ;;  %238 = vmatprep.mubr.msk.bf16.mxu1 %vm250_vm0, %v249_v0  ;;  %v210_v3 = vld [vmem:[%s309_s1] sm:$0xff]   ;;  %v247_v15 = vld [vmem:[%s308_s3 + $0x18] sm:$0xff]   ;;  %24 = vst.msk [vmem:[#allocation2 + $0x8] sm:$0xff] %vm22_vm2, %v249_v0 }
   0x3   :  { %225 = vmatpush3.bf16.msra.mxu0 %v244_v1  ;;  %v214_v4 = vld [vmem:[%s310_s2] sm:$0xff]   ;;  %v211_v5 = vunpack.c.l.bf16 %v210_v3  ;;  %v212_v6 = vunpack.c.h.bf16 %v210_v3 }
   0x4   :  { %226 = vmatprep.subr.bf16.mxu0 %v249_v0  ;;  %v215_v7 = vunpack.c.l.bf16 %v214_v4  ;;  %v216_v8 = vunpack.c.h.bf16 %v214_v4  ;;  %v248_v23 = vld [vmem:[%s311_s0] sm:$0xff]  }
   0x5   :  { %v29_v10 = vmul.f32 0.3, %v211_v5  ;;  %v30_v11 = vmul.f32 0.3, %v212_v6 }
   0x6   :  { %v35_v12 = vmul.f32 0.7, %v215_v7  ;;  %v36_v13 = vmul.f32 0.7, %v216_v8 }
   0x7   :  { %227 = vmatpush3.bf16.msra.mxu0 %v245_v2 }
   0x8   :  { %228 = vmatprep.subr.bf16.mxu0 %v249_v0  ;;  %v37_v14 = vadd.f32 %v35_v12, %v29_v10  ;;  %v38_v16 = vadd.f32 %v36_v13, %v30_v11  ;;  %v118_v24 = vld [vmem:[#allocation2] sm:$0xff] }
   0x9   :  { %v119_v26 = vld [vmem:[#allocation2 + $0x8] sm:$0xff] }
   0xa   :  { %v39_v17 = vpack.c.bf16 %v38_v16, %v37_v14 }
   0xb   :  { %229 = vmatpush3.bf16.msra.mxu0 %v246_v9 }
   0xc   :  { %230 = vmatprep.subr.bf16.mxu0 %v249_v0 }
   0xf   :  { %231 = vmatpush3.bf16.msra.mxu0 %v247_v15 }
  0x12   :  { %233 = vmatmul.mubr.msk.bf16.vlgmr.msra.gmra.mrb[0].mxu0 %vm72_vm1, %v39_v17 }
  0xe5   :  { %v110_v18 = vpop.f32.mrb[0].mxu0 }
  0xe6   :  { %v234_v19 = vpop.f32.mrb[1].mxu0 }
  0xe7   :  { %v113_v20 = vpop.f32.mrb[2].mxu0 }
  0xe8   :  { %v117_v21 = vpack.c.bf16 %v113_v20, %v110_v18  ;;  %v235_v22 = vpop.f32.mrb[3].mxu0 }
  0xea   :  { %237 = vmatpush3.bf16.msra.mxu1 %v117_v21 }
  0xed   :  { %239 = vmatmul.mubr.msk.bf16.vlgmr.msra.gmra.mrb[0].mxu1 %vm22_vm2, %v248_v23 }
 0x1c0   :  { %v165_v25 = vpop.f32.mrb[0].mxu1 }
 0x1c1   :  { %v172_v27 = vadd.f32 %v165_v25, %v118_v24  ;;  %v240_v28 = vpop.f32.mrb[1].mxu1 }
 0x1c2   :  { %v168_v29 = vpop.f32.mrb[2].mxu1 }
 0x1c3   :  { %174 = vst.msk [vmem:[#allocation2] sm:$0xff] %vm22_vm2, %v172_v27  ;;  %v173_v30 = vadd.f32 %v168_v29, %v119_v26  ;;  %v241_v31 = vpop.f32.mrb[3].mxu1 }
 0x1c5   :  { %175 = vst.msk [vmem:[#allocation2 + $0x8] sm:$0xff] %vm22_vm2, %v173_v30 }
 0x1ca   :  { %v179_v32 = vld [vmem:[#allocation2] sm:$0xff] }
 0x1cb   :  { %v181_v33 = vmax.f32 %v179_v32, 0.0 }
 0x1cc   :  { %v180_v34 = vld [vmem:[#allocation2 + $0x8] sm:$0xff] }
 0x1cd   :  { %v207_v35 = vpack.c.bf16 %v181_v33, %v181_v33  ;;  %v182_v36 = vmax.f32 %v180_v34, 0.0 }
 0x1cf   :  { %192 = vst.msk [vmem:[%s312_s4] sm:$0xf] %vm191_vm3, %v207_v35  ;;  %v208_v37 = vpack.c.bf16 %v182_v36, %v182_v36 }
 0x1d1   :  { %193 = vst.msk [vmem:[%s312_s4 + $0x4] sm:$0xf] %vm191_vm3, %v208_v37 }

</bundles_post_ra>
